<compile_context>
chip_gen: v7x
topology: tpu7x:2x2x1
jax: 0.10.0
libtpu: 0.0.40
codegen_flags: <defaults>
</compile_context>

<pallas_src>
import functools

import jax
import jax.numpy as jnp
from jax.experimental import pallas as pl
from jax.experimental.pallas import tpu as pltpu


# ----------------------------------------------------------------------------
# Fused Pallas kernel: whole forward pass for a TB-image batch tile.
#
# Layouts (chosen so every window / pool step is a contiguous slab op):
#   x_ref  : (28, TB, 28)  bf16, H-major  -> conv1 LHS rows ordered (oh1, image)
#   conv1  : (24*TB, 140) @ (140, 240); lanes = dw*120 + co*12 + qw  (ow = 2qw+dw)
#   pool1  : H = max of adjacent TB-row blocks, W = max of lane halves
#   p1_scr : (12, TB, 120) bf16 (pooled-H major) -> conv2 kh windows are contiguous
#   conv2  : (8*TB, 600) @ (600, 160); lanes = dw*80 + co*4 + qw
#   pool2  : same structure; 4 pooled (TB,80) slabs lane-concatenated feed fc1
# ----------------------------------------------------------------------------
def _mnist_fused_kernel(x_ref, w1_ref, b1_ref, w2_ref, b2_ref,
                        wf1_ref, bf1_ref, wf2_ref, bf2_ref,
                        out_ref, c1_scr, p1_scr, c2_scr, *, tb):
    f32 = jnp.float32
    bf16 = jnp.bfloat16

    # ---- conv1 (5x5, CI=1, CO=10): single K-fused banded matmul (K = 5*28) ------
    lhs1 = jnp.concatenate(
        [x_ref[kh:kh + 24, :, :].reshape(24 * tb, 28) for kh in range(5)], axis=-1)
    c1_scr[...] = jnp.dot(lhs1, w1_ref[...], preferred_element_type=f32)

    # ---- maxpool 2x2 + bias + relu ----------------------------------------------
    # Rows of c1_scr are (oh1, image): H-pool is a max of two contiguous tb-row
    # blocks, W-pool a max of the two dw lane halves.  Stored pooled-H major.
    b1 = jnp.broadcast_to(b1_ref[...], (tb, 120))
    for q in range(12):
        hm = jnp.maximum(c1_scr[(2 * q) * tb:(2 * q + 1) * tb, :],
                         c1_scr[(2 * q + 1) * tb:(2 * q + 2) * tb, :])
        wm = jnp.maximum(hm[:, :120], hm[:, 120:])
        p1_scr[q] = jnp.maximum(wm + b1, 0.0).astype(bf16)

    # ---- conv2 (5x5, CI=10, CO=20): single K-fused banded matmul (K = 5*120) ----
    lhs2 = jnp.concatenate(
        [p1_scr[kh:kh + 8, :, :].reshape(8 * tb, 120) for kh in range(5)], axis=-1)
    c2_scr[...] = jnp.dot(lhs2, w2_ref[...], preferred_element_type=f32)

    # ---- maxpool 2x2 + bias + relu; NCHW flatten fused into the fc1 lane order --
    b2 = jnp.broadcast_to(b2_ref[...], (tb, 80))
    p2 = []
    for h in range(4):
        hm = jnp.maximum(c2_scr[(2 * h) * tb:(2 * h + 1) * tb, :],
                         c2_scr[(2 * h + 1) * tb:(2 * h + 2) * tb, :])
        wm = jnp.maximum(hm[:, :80], hm[:, 80:])
        p2.append(jnp.maximum(wm + b2, 0.0).astype(bf16))
    y = jnp.concatenate(p2, axis=-1)                      # (tb, 320), lanes h*80+c*4+w

    # ---- fc1 + relu (dropout = identity), fc2 ------------------------------------
    y = jnp.maximum(jnp.dot(y, wf1_ref[...], preferred_element_type=f32)
                    + bf1_ref[...], 0.0)
    logits = jnp.dot(y.astype(bf16), wf2_ref[...],
                     preferred_element_type=f32) + bf2_ref[...]
    out_ref[...] = logits.astype(out_ref.dtype)


# ----------------------------------------------------------------------------
# One-time weight preprocessing (outside the jitted forward).
# ----------------------------------------------------------------------------
def prepare_params(params):
    f32, bf16 = jnp.float32, jnp.bfloat16

    # conv1 band (K-fused): band1[kh*28 + w_in, dw*120 + co*12 + qw]
    #   = w1[co, 0, kh, w_in - (2*qw + dw)]   (zero for invalid taps)
    w1 = params["conv1_w"].astype(f32)[:, 0]                        # (10,5,5) [co,kh,kw]
    ow1 = 2 * jnp.arange(12)[None, :] + jnp.arange(2)[:, None]      # (2,12)  [dw,qw]
    kw1 = jnp.arange(28)[:, None, None] - ow1[None]                 # (28,2,12)
    v1 = (kw1 >= 0) & (kw1 < 5)
    band1 = w1[:, :, jnp.clip(kw1, 0, 4)]                           # (10,5,28,2,12)
    band1 = jnp.where(v1[None, None], band1, 0.0)
    band1 = jnp.transpose(band1, (1, 2, 3, 0, 4)).reshape(140, 240)  # [(kh,w_in),(dw,co,qw)]

    # conv2 band (K-fused): rows kh*120 + ci*12 + w_in, lanes dw*80 + co*4 + qw
    w2 = params["conv2_w"].astype(f32)                              # (20,10,5,5) [co,ci,kh,kw]
    ow2 = 2 * jnp.arange(4)[None, :] + jnp.arange(2)[:, None]       # (2,4)
    kw2 = jnp.arange(12)[:, None, None] - ow2[None]                 # (12,2,4)
    v2 = (kw2 >= 0) & (kw2 < 5)
    band2 = w2[:, :, :, jnp.clip(kw2, 0, 4)]                        # (20,10,5,12,2,4)
    band2 = jnp.where(v2[None, None, None], band2, 0.0)
    band2 = jnp.transpose(band2, (2, 1, 3, 4, 0, 5)).reshape(600, 160)

    # fc1: torch flattens NCHW (c*16 + h*4 + w); the kernel's fused fc1 LHS lane
    # order is h*80 + c*4 + w, so permute once here into a single (320, 50) matrix.
    wf1 = params["fc1_w"].astype(f32).reshape(50, 20, 4, 4)         # [o, c, h, w]
    wf1 = jnp.transpose(wf1, (2, 1, 3, 0)).reshape(320, 50)         # [(h,c,w), o]

    return {
        "w1band": band1.astype(bf16),
        "b1e": jnp.repeat(params["conv1_b"].astype(f32), 12).reshape(1, 120),
        "w2band": band2.astype(bf16),
        "b2e": jnp.repeat(params["conv2_b"].astype(f32), 4).reshape(1, 80),
        "wfc1": wf1.astype(bf16),
        "bfc1": params["fc1_b"].astype(f32).reshape(1, 50),
        "wfc2": params["fc2_w"].astype(f32).T.astype(bf16),         # (50, 10)
        "bfc2": params["fc2_b"].astype(f32).reshape(1, 10),
    }


def _round_up(a, m):
    return (a + m - 1) // m * m


@jax.jit
def mnist_cnn_forward(x_nchw, prep):
    N, C, H, W = x_nchw.shape
    assert (C, H, W) == (1, 28, 28), "MnistCNN hard-codes 320 = 20*4*4 (28x28 inputs)"

    # Batch tile: 128 keeps every matmul M >= 1024, leaves a multi-step grid for
    # pipelining / megacore at common batch sizes, and the per-tile footprint at a
    # few MB (v7x-safe).  Sweep 128-256 for very large batches on v5e/v6e.
    TB = 128 if N >= 128 else _round_up(max(N, 1), 8)
    N_pad = _round_up(N, TB)

    # bf16 + H-major (28, N, 28): halves the HBM input stream and makes every conv
    # kh-window and H-pool inside the kernel a contiguous leading-dim slab.
    x = x_nchw.reshape(N, 28, 28).astype(jnp.bfloat16)
    if N_pad != N:
        x = jnp.pad(x, ((0, N_pad - N), (0, 0), (0, 0)))
    x_t = jnp.transpose(x, (1, 0, 2))                      # (28, N_pad, 28)

    # Real banded-matmul FLOPs (not the mathematical conv FLOPs).
    flops = N_pad * (2 * 24 * 140 * 240 + 2 * 8 * 600 * 160
                     + 2 * 320 * 50 + 2 * 50 * 10)
    weight_bytes = sum(int(v.size) * v.dtype.itemsize for v in prep.values())
    bytes_accessed = N_pad * 28 * 28 * 2 + N_pad * 10 * 4 + weight_bytes

    # VMEM budget from the actual tile footprint (2x margin), floored at the 32 MiB
    # scoped default and capped at 48 MiB so it stays safe on v7x (64 MiB/TC).
    tile_vmem = (2 * 28 * TB * 28 * 2          # double-buffered bf16 input tile
                 + 24 * TB * 256 * 4           # c1 scratch (lanes pad 240->256)
                 + 12 * TB * 128 * 2           # p1 scratch (lanes pad 120->128)
                 + 8 * TB * 256 * 4            # c2 scratch (lanes pad 160->256)
                 + 24 * TB * 256 * 2           # conv1 LHS value (K=140 -> 2 vregs)
                 + 8 * TB * 640 * 2            # conv2 LHS value (K=600 -> 5 vregs)
                 + 2 * weight_bytes)
    vmem_limit = int(min(48 * 1024 * 1024, max(32 * 1024 * 1024, 2 * tile_vmem)))

    out = pl.pallas_call(
        functools.partial(_mnist_fused_kernel, tb=TB),
        out_shape=jax.ShapeDtypeStruct((N_pad, 10), jnp.float32),
        grid_spec=pltpu.PrefetchScalarGridSpec(
            num_scalar_prefetch=0,
            grid=(N_pad // TB,),
            in_specs=[
                pl.BlockSpec((28, TB, 28), lambda i: (0, i, 0)),   # x, H-major, bf16
                pl.BlockSpec((140, 240), lambda i: (0, 0)),        # conv1 band (K-fused)
                pl.BlockSpec((1, 120), lambda i: (0, 0)),          # conv1 bias (expanded)
                pl.BlockSpec((600, 160), lambda i: (0, 0)),        # conv2 band (K-fused)
                pl.BlockSpec((1, 80), lambda i: (0, 0)),           # conv2 bias (expanded)
                pl.BlockSpec((320, 50), lambda i: (0, 0)),         # fc1 (flatten-permuted)
                pl.BlockSpec((1, 50), lambda i: (0, 0)),           # fc1 bias
                pl.BlockSpec((50, 10), lambda i: (0, 0)),          # fc2
                pl.BlockSpec((1, 10), lambda i: (0, 0)),           # fc2 bias
            ],
            out_specs=pl.BlockSpec((TB, 10), lambda i: (i, 0)),
            scratch_shapes=[
                pltpu.VMEM((24 * TB, 240), jnp.float32),  # conv1 pre-pool activations
                pltpu.VMEM((12, TB, 120), jnp.bfloat16),  # pool1 output (pooled-H major)
                pltpu.VMEM((8 * TB, 160), jnp.float32),   # conv2 pre-pool activations
            ],
        ),
        compiler_params=pltpu.CompilerParams(
            dimension_semantics=("parallel",),
            vmem_limit_bytes=vmem_limit,
        ),
        cost_estimate=pl.CostEstimate(
            flops=flops, transcendentals=0, bytes_accessed=bytes_accessed),
    )(x_t, prep["w1band"], prep["b1e"], prep["w2band"], prep["b2e"],
      prep["wfc1"], prep["bfc1"], prep["wfc2"], prep["bfc2"])
    return out[:N]


# ----------------------------------------------------------------------------
# Parameter init (torch layouts) and a pure-JAX reference for verification.
# ----------------------------------------------------------------------------
def init_params(key):
    ks = jax.random.split(key, 8)
    scale = 0.1
    return {
        "conv1_w": scale * jax.random.normal(ks[0], (10, 1, 5, 5), jnp.float32),
        "conv1_b": scale * jax.random.normal(ks[1], (10,), jnp.float32),
        "conv2_w": scale * jax.random.normal(ks[2], (20, 10, 5, 5), jnp.float32),
        "conv2_b": scale * jax.random.normal(ks[3], (20,), jnp.float32),
        "fc1_w": scale * jax.random.normal(ks[4], (50, 320), jnp.float32),  # torch (out, in)
        "fc1_b": scale * jax.random.normal(ks[5], (50,), jnp.float32),
        "fc2_w": scale * jax.random.normal(ks[6], (10, 50), jnp.float32),
        "fc2_b": scale * jax.random.normal(ks[7], (10,), jnp.float32),
    }


def _reference_forward(x_nchw, params):
    dn = ("NCHW", "OIHW", "NCHW")
    y = jax.lax.conv_general_dilated(x_nchw.astype(jnp.float32), params["conv1_w"],
                                     (1, 1), "VALID", dimension_numbers=dn)
    y = y + params["conv1_b"][None, :, None, None]
    y = jax.lax.reduce_window(y, -jnp.inf, jax.lax.max, (1, 1, 2, 2), (1, 1, 2, 2), "VALID")
    y = jax.nn.relu(y)
    y = jax.lax.conv_general_dilated(y, params["conv2_w"], (1, 1), "VALID",
                                     dimension_numbers=dn)
    y = y + params["conv2_b"][None, :, None, None]
    y = jax.lax.reduce_window(y, -jnp.inf, jax.lax.max, (1, 1, 2, 2), (1, 1, 2, 2), "VALID")
    y = jax.nn.relu(y)
    y = y.reshape(y.shape[0], 320)
    y = jax.nn.relu(y @ params["fc1_w"].T + params["fc1_b"])
    y = y @ params["fc2_w"].T + params["fc2_b"]
    return y


if __name__ == "__main__":
    key = jax.random.PRNGKey(0)
    k_x, k_p = jax.random.split(key)
    params = init_params(k_p)
    prep = prepare_params(params)   # one-time weight reshuffle, outside the jitted forward

    # Small batch (single tile, TB=8).
    x = jax.random.normal(k_x, (2, 1, 28, 28), jnp.float32)
    out = jax.block_until_ready(mnist_cnn_forward(x, prep))
    assert out.shape == (2, 10)
    assert bool(jnp.all(jnp.isfinite(out)))
    ref = _reference_forward(x, params)
    assert bool(jnp.allclose(out, ref, atol=0.1, rtol=0.1)), (
        f"max abs err {float(jnp.max(jnp.abs(out - ref)))}")

    # Multi-tile path (TB=128, grid=2, exercises batch padding).  Slightly looser
    # atol: max over 1440 logits of bf16-operand rounding noise.
    x2 = jax.random.normal(k_x, (144, 1, 28, 28), jnp.float32)
    out2 = jax.block_until_ready(mnist_cnn_forward(x2, prep))
    assert out2.shape == (144, 10)
    ref2 = _reference_forward(x2, params)
    assert bool(jnp.allclose(out2, ref2, atol=0.15, rtol=0.1)), (
        f"max abs err {float(jnp.max(jnp.abs(out2 - ref2)))}")

    print("KERNEL_OK")
</pallas_src>

<mosaic_0001>
module attributes {stable_mosaic.version = 11 : i64} {
  func.func @_mnist_fused_kernel(%arg0: i32, %arg1: memref<28x8x28xbf16, #tpu.memory_space<vmem>>, %arg2: memref<140x240xbf16, #tpu.memory_space<vmem>>, %arg3: memref<1x120xf32, #tpu.memory_space<vmem>>, %arg4: memref<600x160xbf16, #tpu.memory_space<vmem>>, %arg5: memref<1x80xf32, #tpu.memory_space<vmem>>, %arg6: memref<320x50xbf16, #tpu.memory_space<vmem>>, %arg7: memref<1x50xf32, #tpu.memory_space<vmem>>, %arg8: memref<50x10xbf16, #tpu.memory_space<vmem>>, %arg9: memref<1x10xf32, #tpu.memory_space<vmem>>, %arg10: memref<8x10xf32, #tpu.memory_space<vmem>>, %arg11: memref<192x240xf32, #tpu.memory_space<vmem>>, %arg12: memref<12x8x120xbf16, #tpu.memory_space<vmem>>, %arg13: memref<64x160xf32, #tpu.memory_space<vmem>>) attributes {dimension_semantics = [#tpu.dimension_semantics<parallel>], iteration_bounds = array<i64: 1>, scalar_prefetch = 0 : i64, scratch_operands = 3 : i64, tpu.core_type = #tpu.core_type<tc>, window_params = [{transform_indices = @transform_0, window_bounds = array<i64: 28, 8, 28>}, {pipeline_mode = #tpu.pipeline_mode<synchronous>, transform_indices = @transform_1, window_bounds = array<i64: 140, 240>}, {pipeline_mode = #tpu.pipeline_mode<synchronous>, transform_indices = @transform_2, window_bounds = array<i64: 1, 120>}, {pipeline_mode = #tpu.pipeline_mode<synchronous>, transform_indices = @transform_3, window_bounds = array<i64: 600, 160>}, {pipeline_mode = #tpu.pipeline_mode<synchronous>, transform_indices = @transform_4, window_bounds = array<i64: 1, 80>}, {pipeline_mode = #tpu.pipeline_mode<synchronous>, transform_indices = @transform_5, window_bounds = array<i64: 320, 50>}, {pipeline_mode = #tpu.pipeline_mode<synchronous>, transform_indices = @transform_6, window_bounds = array<i64: 1, 50>}, {pipeline_mode = #tpu.pipeline_mode<synchronous>, transform_indices = @transform_7, window_bounds = array<i64: 50, 10>}, {pipeline_mode = #tpu.pipeline_mode<synchronous>, transform_indices = @transform_8, window_bounds = array<i64: 1, 10>}, {transform_indices = @transform_9, window_bounds = array<i64: 8, 10>}]} {
    %c0 = arith.constant 0 : index
    %c0_0 = arith.constant 0 : index
    %c0_1 = arith.constant 0 : index
    %0 = vector.load %arg1[%c0, %c0_0, %c0_1] : memref<28x8x28xbf16, #tpu.memory_space<vmem>>, vector<24x8x28xbf16>
    %1 = vector.shape_cast %0 : vector<24x8x28xbf16> to vector<192x28xbf16>
    %c1 = arith.constant 1 : index
    %c0_2 = arith.constant 0 : index
    %c0_3 = arith.constant 0 : index
    %2 = vector.load %arg1[%c1, %c0_2, %c0_3] : memref<28x8x28xbf16, #tpu.memory_space<vmem>>, vector<24x8x28xbf16>
    %3 = vector.shape_cast %2 : vector<24x8x28xbf16> to vector<192x28xbf16>
    %c2 = arith.constant 2 : index
    %c0_4 = arith.constant 0 : index
    %c0_5 = arith.constant 0 : index
    %4 = vector.load %arg1[%c2, %c0_4, %c0_5] : memref<28x8x28xbf16, #tpu.memory_space<vmem>>, vector<24x8x28xbf16>
    %5 = vector.shape_cast %4 : vector<24x8x28xbf16> to vector<192x28xbf16>
    %c3 = arith.constant 3 : index
    %c0_6 = arith.constant 0 : index
    %c0_7 = arith.constant 0 : index
    %6 = vector.load %arg1[%c3, %c0_6, %c0_7] : memref<28x8x28xbf16, #tpu.memory_space<vmem>>, vector<24x8x28xbf16>
    %7 = vector.shape_cast %6 : vector<24x8x28xbf16> to vector<192x28xbf16>
    %c4 = arith.constant 4 : index
    %c0_8 = arith.constant 0 : index
    %c0_9 = arith.constant 0 : index
    %8 = vector.load %arg1[%c4, %c0_8, %c0_9] : memref<28x8x28xbf16, #tpu.memory_space<vmem>>, vector<24x8x28xbf16>
    %9 = vector.shape_cast %8 : vector<24x8x28xbf16> to vector<192x28xbf16>
    %10 = tpu.concatenate %1, %3, %5, %7, %9 in 1 : vector<192x28xbf16>, vector<192x28xbf16>, vector<192x28xbf16>, vector<192x28xbf16>, vector<192x28xbf16> -> vector<192x140xbf16>
    %c0_10 = arith.constant 0 : index
    %c0_11 = arith.constant 0 : index
    %11 = vector.load %arg2[%c0_10, %c0_11] : memref<140x240xbf16, #tpu.memory_space<vmem>>, vector<140x240xbf16>
    %cst = arith.constant dense<0.000000e+00> : vector<192x240xf32>
    %12 = tpu.matmul %10, %11, %cst {dimension_numbers = #tpu.dot_dimension_numbers<[1], [0], [0], [1], [0, 0, 1, 1], [], []>} : vector<192x140xbf16>, vector<140x240xbf16>, vector<192x240xf32> -> vector<192x240xf32>
    %c0_12 = arith.constant 0 : index
    %c0_13 = arith.constant 0 : index
    %13 = vector.load %arg11[%c0_12, %c0_13] : memref<192x240xf32, #tpu.memory_space<vmem>>, vector<192x240xf32>
    tpu.vector_store %arg11[%c0_12, %c0_13], %12 {strides = array<i32>} : memref<192x240xf32, #tpu.memory_space<vmem>>, vector<192x240xf32>,
    %c0_14 = arith.constant 0 : index
    %c0_15 = arith.constant 0 : index
    %14 = vector.load %arg3[%c0_14, %c0_15] : memref<1x120xf32, #tpu.memory_space<vmem>>, vector<1x120xf32>
    %15 = vector.shape_cast %14 : vector<1x120xf32> to vector<1x120xf32>
    %16 = vector.broadcast %15 : vector<1x120xf32> to vector<8x120xf32>
    %c0_16 = arith.constant 0 : index
    %c0_17 = arith.constant 0 : index
    %17 = vector.load %arg11[%c0_16, %c0_17] : memref<192x240xf32, #tpu.memory_space<vmem>>, vector<8x240xf32>
    %c8 = arith.constant 8 : index
    %c0_18 = arith.constant 0 : index
    %18 = vector.load %arg11[%c8, %c0_18] : memref<192x240xf32, #tpu.memory_space<vmem>>, vector<8x240xf32>
    %19 = arith.maximumf %17, %18 : vector<8x240xf32>
    %20 = vector.extract_strided_slice %19 {offsets = [0, 0], sizes = [8, 120], strides = [1, 1]} : vector<8x240xf32> to vector<8x120xf32>
    %21 = vector.extract_strided_slice %19 {offsets = [0, 120], sizes = [8, 120], strides = [1, 1]} : vector<8x240xf32> to vector<8x120xf32>
    %22 = arith.maximumf %20, %21 : vector<8x120xf32>
    %23 = arith.addf %22, %16 : vector<8x120xf32>
    %cst_19 = arith.constant 0.000000e+00 : f32
    %24 = vector.broadcast %cst_19 : f32 to vector<8x120xf32>
    %25 = arith.maximumf %23, %24 : vector<8x120xf32>
    %26 = arith.truncf %25 : vector<8x120xf32> to vector<8x120xbf16>
    %c0_20 = arith.constant 0 : index
    %c0_21 = arith.constant 0 : index
    %c0_22 = arith.constant 0 : index
    %27 = vector.load %arg12[%c0_20, %c0_21, %c0_22] : memref<12x8x120xbf16, #tpu.memory_space<vmem>>, vector<1x8x120xbf16>
    %28 = vector.shape_cast %27 : vector<1x8x120xbf16> to vector<8x120xbf16>
    %29 = vector.shape_cast %26 : vector<8x120xbf16> to vector<1x8x120xbf16>
    tpu.vector_store %arg12[%c0_20, %c0_21, %c0_22], %29 {strides = array<i32>} : memref<12x8x120xbf16, #tpu.memory_space<vmem>>, vector<1x8x120xbf16>,
    %c16 = arith.constant 16 : index
    %c0_23 = arith.constant 0 : index
    %30 = vector.load %arg11[%c16, %c0_23] : memref<192x240xf32, #tpu.memory_space<vmem>>, vector<8x240xf32>
    %c24 = arith.constant 24 : index
    %c0_24 = arith.constant 0 : index
    %31 = vector.load %arg11[%c24, %c0_24] : memref<192x240xf32, #tpu.memory_space<vmem>>, vector<8x240xf32>
    %32 = arith.maximumf %30, %31 : vector<8x240xf32>
    %33 = vector.extract_strided_slice %32 {offsets = [0, 0], sizes = [8, 120], strides = [1, 1]} : vector<8x240xf32> to vector<8x120xf32>
    %34 = vector.extract_strided_slice %32 {offsets = [0, 120], sizes = [8, 120], strides = [1, 1]} : vector<8x240xf32> to vector<8x120xf32>
    %35 = arith.maximumf %33, %34 : vector<8x120xf32>
    %36 = arith.addf %35, %16 : vector<8x120xf32>
    %cst_25 = arith.constant 0.000000e+00 : f32
    %37 = vector.broadcast %cst_25 : f32 to vector<8x120xf32>
    %38 = arith.maximumf %36, %37 : vector<8x120xf32>
    %39 = arith.truncf %38 : vector<8x120xf32> to vector<8x120xbf16>
    %c1_26 = arith.constant 1 : index
    %c0_27 = arith.constant 0 : index
    %c0_28 = arith.constant 0 : index
    %40 = vector.load %arg12[%c1_26, %c0_27, %c0_28] : memref<12x8x120xbf16, #tpu.memory_space<vmem>>, vector<1x8x120xbf16>
    %41 = vector.shape_cast %40 : vector<1x8x120xbf16> to vector<8x120xbf16>
    %42 = vector.shape_cast %39 : vector<8x120xbf16> to vector<1x8x120xbf16>
    tpu.vector_store %arg12[%c1_26, %c0_27, %c0_28], %42 {strides = array<i32>} : memref<12x8x120xbf16, #tpu.memory_space<vmem>>, vector<1x8x120xbf16>,
    %c32 = arith.constant 32 : index
    %c0_29 = arith.constant 0 : index
    %43 = vector.load %arg11[%c32, %c0_29] : memref<192x240xf32, #tpu.memory_space<vmem>>, vector<8x240xf32>
    %c40 = arith.constant 40 : index
    %c0_30 = arith.constant 0 : index
    %44 = vector.load %arg11[%c40, %c0_30] : memref<192x240xf32, #tpu.memory_space<vmem>>, vector<8x240xf32>
    %45 = arith.maximumf %43, %44 : vector<8x240xf32>
    %46 = vector.extract_strided_slice %45 {offsets = [0, 0], sizes = [8, 120], strides = [1, 1]} : vector<8x240xf32> to vector<8x120xf32>
    %47 = vector.extract_strided_slice %45 {offsets = [0, 120], sizes = [8, 120], strides = [1, 1]} : vector<8x240xf32> to vector<8x120xf32>
    %48 = arith.maximumf %46, %47 : vector<8x120xf32>
    %49 = arith.addf %48, %16 : vector<8x120xf32>
    %cst_31 = arith.constant 0.000000e+00 : f32
    %50 = vector.broadcast %cst_31 : f32 to vector<8x120xf32>
    %51 = arith.maximumf %49, %50 : vector<8x120xf32>
    %52 = arith.truncf %51 : vector<8x120xf32> to vector<8x120xbf16>
    %c2_32 = arith.constant 2 : index
    %c0_33 = arith.constant 0 : index
    %c0_34 = arith.constant 0 : index
    %53 = vector.load %arg12[%c2_32, %c0_33, %c0_34] : memref<12x8x120xbf16, #tpu.memory_space<vmem>>, vector<1x8x120xbf16>
    %54 = vector.shape_cast %53 : vector<1x8x120xbf16> to vector<8x120xbf16>
    %55 = vector.shape_cast %52 : vector<8x120xbf16> to vector<1x8x120xbf16>
    tpu.vector_store %arg12[%c2_32, %c0_33, %c0_34], %55 {strides = array<i32>} : memref<12x8x120xbf16, #tpu.memory_space<vmem>>, vector<1x8x120xbf16>,
    %c48 = arith.constant 48 : index
    %c0_35 = arith.constant 0 : index
    %56 = vector.load %arg11[%c48, %c0_35] : memref<192x240xf32, #tpu.memory_space<vmem>>, vector<8x240xf32>
    %c56 = arith.constant 56 : index
    %c0_36 = arith.constant 0 : index
    %57 = vector.load %arg11[%c56, %c0_36] : memref<192x240xf32, #tpu.memory_space<vmem>>, vector<8x240xf32>
    %58 = arith.maximumf %56, %57 : vector<8x240xf32>
    %59 = vector.extract_strided_slice %58 {offsets = [0, 0], sizes = [8, 120], strides = [1, 1]} : vector<8x240xf32> to vector<8x120xf32>
    %60 = vector.extract_strided_slice %58 {offsets = [0, 120], sizes = [8, 120], strides = [1, 1]} : vector<8x240xf32> to vector<8x120xf32>
    %61 = arith.maximumf %59, %60 : vector<8x120xf32>
    %62 = arith.addf %61, %16 : vector<8x120xf32>
    %cst_37 = arith.constant 0.000000e+00 : f32
    %63 = vector.broadcast %cst_37 : f32 to vector<8x120xf32>
    %64 = arith.maximumf %62, %63 : vector<8x120xf32>
    %65 = arith.truncf %64 : vector<8x120xf32> to vector<8x120xbf16>
    %c3_38 = arith.constant 3 : index
    %c0_39 = arith.constant 0 : index
    %c0_40 = arith.constant 0 : index
    %66 = vector.load %arg12[%c3_38, %c0_39, %c0_40] : memref<12x8x120xbf16, #tpu.memory_space<vmem>>, vector<1x8x120xbf16>
    %67 = vector.shape_cast %66 : vector<1x8x120xbf16> to vector<8x120xbf16>
    %68 = vector.shape_cast %65 : vector<8x120xbf16> to vector<1x8x120xbf16>
    tpu.vector_store %arg12[%c3_38, %c0_39, %c0_40], %68 {strides = array<i32>} : memref<12x8x120xbf16, #tpu.memory_space<vmem>>, vector<1x8x120xbf16>,
    %c64 = arith.constant 64 : index
    %c0_41 = arith.constant 0 : index
    %69 = vector.load %arg11[%c64, %c0_41] : memref<192x240xf32, #tpu.memory_space<vmem>>, vector<8x240xf32>
    %c72 = arith.constant 72 : index
    %c0_42 = arith.constant 0 : index
    %70 = vector.load %arg11[%c72, %c0_42] : memref<192x240xf32, #tpu.memory_space<vmem>>, vector<8x240xf32>
    %71 = arith.maximumf %69, %70 : vector<8x240xf32>
    %72 = vector.extract_strided_slice %71 {offsets = [0, 0], sizes = [8, 120], strides = [1, 1]} : vector<8x240xf32> to vector<8x120xf32>
    %73 = vector.extract_strided_slice %71 {offsets = [0, 120], sizes = [8, 120], strides = [1, 1]} : vector<8x240xf32> to vector<8x120xf32>
    %74 = arith.maximumf %72, %73 : vector<8x120xf32>
    %75 = arith.addf %74, %16 : vector<8x120xf32>
    %cst_43 = arith.constant 0.000000e+00 : f32
    %76 = vector.broadcast %cst_43 : f32 to vector<8x120xf32>
    %77 = arith.maximumf %75, %76 : vector<8x120xf32>
    %78 = arith.truncf %77 : vector<8x120xf32> to vector<8x120xbf16>
    %c4_44 = arith.constant 4 : index
    %c0_45 = arith.constant 0 : index
    %c0_46 = arith.constant 0 : index
    %79 = vector.load %arg12[%c4_44, %c0_45, %c0_46] : memref<12x8x120xbf16, #tpu.memory_space<vmem>>, vector<1x8x120xbf16>
    %80 = vector.shape_cast %79 : vector<1x8x120xbf16> to vector<8x120xbf16>
    %81 = vector.shape_cast %78 : vector<8x120xbf16> to vector<1x8x120xbf16>
    tpu.vector_store %arg12[%c4_44, %c0_45, %c0_46], %81 {strides = array<i32>} : memref<12x8x120xbf16, #tpu.memory_space<vmem>>, vector<1x8x120xbf16>,
    %c80 = arith.constant 80 : index
    %c0_47 = arith.constant 0 : index
    %82 = vector.load %arg11[%c80, %c0_47] : memref<192x240xf32, #tpu.memory_space<vmem>>, vector<8x240xf32>
    %c88 = arith.constant 88 : index
    %c0_48 = arith.constant 0 : index
    %83 = vector.load %arg11[%c88, %c0_48] : memref<192x240xf32, #tpu.memory_space<vmem>>, vector<8x240xf32>
    %84 = arith.maximumf %82, %83 : vector<8x240xf32>
    %85 = vector.extract_strided_slice %84 {offsets = [0, 0], sizes = [8, 120], strides = [1, 1]} : vector<8x240xf32> to vector<8x120xf32>
    %86 = vector.extract_strided_slice %84 {offsets = [0, 120], sizes = [8, 120], strides = [1, 1]} : vector<8x240xf32> to vector<8x120xf32>
    %87 = arith.maximumf %85, %86 : vector<8x120xf32>
    %88 = arith.addf %87, %16 : vector<8x120xf32>
    %cst_49 = arith.constant 0.000000e+00 : f32
    %89 = vector.broadcast %cst_49 : f32 to vector<8x120xf32>
    %90 = arith.maximumf %88, %89 : vector<8x120xf32>
    %91 = arith.truncf %90 : vector<8x120xf32> to vector<8x120xbf16>
    %c5 = arith.constant 5 : index
    %c0_50 = arith.constant 0 : index
    %c0_51 = arith.constant 0 : index
    %92 = vector.load %arg12[%c5, %c0_50, %c0_51] : memref<12x8x120xbf16, #tpu.memory_space<vmem>>, vector<1x8x120xbf16>
    %93 = vector.shape_cast %92 : vector<1x8x120xbf16> to vector<8x120xbf16>
    %94 = vector.shape_cast %91 : vector<8x120xbf16> to vector<1x8x120xbf16>
    tpu.vector_store %arg12[%c5, %c0_50, %c0_51], %94 {strides = array<i32>} : memref<12x8x120xbf16, #tpu.memory_space<vmem>>, vector<1x8x120xbf16>,
    %c96 = arith.constant 96 : index
    %c0_52 = arith.constant 0 : index
    %95 = vector.load %arg11[%c96, %c0_52] : memref<192x240xf32, #tpu.memory_space<vmem>>, vector<8x240xf32>
    %c104 = arith.constant 104 : index
    %c0_53 = arith.constant 0 : index
    %96 = vector.load %arg11[%c104, %c0_53] : memref<192x240xf32, #tpu.memory_space<vmem>>, vector<8x240xf32>
    %97 = arith.maximumf %95, %96 : vector<8x240xf32>
    %98 = vector.extract_strided_slice %97 {offsets = [0, 0], sizes = [8, 120], strides = [1, 1]} : vector<8x240xf32> to vector<8x120xf32>
    %99 = vector.extract_strided_slice %97 {offsets = [0, 120], sizes = [8, 120], strides = [1, 1]} : vector<8x240xf32> to vector<8x120xf32>
    %100 = arith.maximumf %98, %99 : vector<8x120xf32>
    %101 = arith.addf %100, %16 : vector<8x120xf32>
    %cst_54 = arith.constant 0.000000e+00 : f32
    %102 = vector.broadcast %cst_54 : f32 to vector<8x120xf32>
    %103 = arith.maximumf %101, %102 : vector<8x120xf32>
    %104 = arith.truncf %103 : vector<8x120xf32> to vector<8x120xbf16>
    %c6 = arith.constant 6 : index
    %c0_55 = arith.constant 0 : index
    %c0_56 = arith.constant 0 : index
    %105 = vector.load %arg12[%c6, %c0_55, %c0_56] : memref<12x8x120xbf16, #tpu.memory_space<vmem>>, vector<1x8x120xbf16>
    %106 = vector.shape_cast %105 : vector<1x8x120xbf16> to vector<8x120xbf16>
    %107 = vector.shape_cast %104 : vector<8x120xbf16> to vector<1x8x120xbf16>
    tpu.vector_store %arg12[%c6, %c0_55, %c0_56], %107 {strides = array<i32>} : memref<12x8x120xbf16, #tpu.memory_space<vmem>>, vector<1x8x120xbf16>,
    %c112 = arith.constant 112 : index
    %c0_57 = arith.constant 0 : index
    %108 = vector.load %arg11[%c112, %c0_57] : memref<192x240xf32, #tpu.memory_space<vmem>>, vector<8x240xf32>
    %c120 = arith.constant 120 : index
    %c0_58 = arith.constant 0 : index
    %109 = vector.load %arg11[%c120, %c0_58] : memref<192x240xf32, #tpu.memory_space<vmem>>, vector<8x240xf32>
    %110 = arith.maximumf %108, %109 : vector<8x240xf32>
    %111 = vector.extract_strided_slice %110 {offsets = [0, 0], sizes = [8, 120], strides = [1, 1]} : vector<8x240xf32> to vector<8x120xf32>
    %112 = vector.extract_strided_slice %110 {offsets = [0, 120], sizes = [8, 120], strides = [1, 1]} : vector<8x240xf32> to vector<8x120xf32>
    %113 = arith.maximumf %111, %112 : vector<8x120xf32>
    %114 = arith.addf %113, %16 : vector<8x120xf32>
    %cst_59 = arith.constant 0.000000e+00 : f32
    %115 = vector.broadcast %cst_59 : f32 to vector<8x120xf32>
    %116 = arith.maximumf %114, %115 : vector<8x120xf32>
    %117 = arith.truncf %116 : vector<8x120xf32> to vector<8x120xbf16>
    %c7 = arith.constant 7 : index
    %c0_60 = arith.constant 0 : index
    %c0_61 = arith.constant 0 : index
    %118 = vector.load %arg12[%c7, %c0_60, %c0_61] : memref<12x8x120xbf16, #tpu.memory_space<vmem>>, vector<1x8x120xbf16>
    %119 = vector.shape_cast %118 : vector<1x8x120xbf16> to vector<8x120xbf16>
    %120 = vector.shape_cast %117 : vector<8x120xbf16> to vector<1x8x120xbf16>
    tpu.vector_store %arg12[%c7, %c0_60, %c0_61], %120 {strides = array<i32>} : memref<12x8x120xbf16, #tpu.memory_space<vmem>>, vector<1x8x120xbf16>,
    %c128 = arith.constant 128 : index
    %c0_62 = arith.constant 0 : index
    %121 = vector.load %arg11[%c128, %c0_62] : memref<192x240xf32, #tpu.memory_space<vmem>>, vector<8x240xf32>
    %c136 = arith.constant 136 : index
    %c0_63 = arith.constant 0 : index
    %122 = vector.load %arg11[%c136, %c0_63] : memref<192x240xf32, #tpu.memory_space<vmem>>, vector<8x240xf32>
    %123 = arith.maximumf %121, %122 : vector<8x240xf32>
    %124 = vector.extract_strided_slice %123 {offsets = [0, 0], sizes = [8, 120], strides = [1, 1]} : vector<8x240xf32> to vector<8x120xf32>
    %125 = vector.extract_strided_slice %123 {offsets = [0, 120], sizes = [8, 120], strides = [1, 1]} : vector<8x240xf32> to vector<8x120xf32>
    %126 = arith.maximumf %124, %125 : vector<8x120xf32>
    %127 = arith.addf %126, %16 : vector<8x120xf32>
    %cst_64 = arith.constant 0.000000e+00 : f32
    %128 = vector.broadcast %cst_64 : f32 to vector<8x120xf32>
    %129 = arith.maximumf %127, %128 : vector<8x120xf32>
    %130 = arith.truncf %129 : vector<8x120xf32> to vector<8x120xbf16>
    %c8_65 = arith.constant 8 : index
    %c0_66 = arith.constant 0 : index
    %c0_67 = arith.constant 0 : index
    %131 = vector.load %arg12[%c8_65, %c0_66, %c0_67] : memref<12x8x120xbf16, #tpu.memory_space<vmem>>, vector<1x8x120xbf16>
    %132 = vector.shape_cast %131 : vector<1x8x120xbf16> to vector<8x120xbf16>
    %133 = vector.shape_cast %130 : vector<8x120xbf16> to vector<1x8x120xbf16>
    tpu.vector_store %arg12[%c8_65, %c0_66, %c0_67], %133 {strides = array<i32>} : memref<12x8x120xbf16, #tpu.memory_space<vmem>>, vector<1x8x120xbf16>,
    %c144 = arith.constant 144 : index
    %c0_68 = arith.constant 0 : index
    %134 = vector.load %arg11[%c144, %c0_68] : memref<192x240xf32, #tpu.memory_space<vmem>>, vector<8x240xf32>
    %c152 = arith.constant 152 : index
    %c0_69 = arith.constant 0 : index
    %135 = vector.load %arg11[%c152, %c0_69] : memref<192x240xf32, #tpu.memory_space<vmem>>, vector<8x240xf32>
    %136 = arith.maximumf %134, %135 : vector<8x240xf32>
    %137 = vector.extract_strided_slice %136 {offsets = [0, 0], sizes = [8, 120], strides = [1, 1]} : vector<8x240xf32> to vector<8x120xf32>
    %138 = vector.extract_strided_slice %136 {offsets = [0, 120], sizes = [8, 120], strides = [1, 1]} : vector<8x240xf32> to vector<8x120xf32>
    %139 = arith.maximumf %137, %138 : vector<8x120xf32>
    %140 = arith.addf %139, %16 : vector<8x120xf32>
    %cst_70 = arith.constant 0.000000e+00 : f32
    %141 = vector.broadcast %cst_70 : f32 to vector<8x120xf32>
    %142 = arith.maximumf %140, %141 : vector<8x120xf32>
    %143 = arith.truncf %142 : vector<8x120xf32> to vector<8x120xbf16>
    %c9 = arith.constant 9 : index
    %c0_71 = arith.constant 0 : index
    %c0_72 = arith.constant 0 : index
    %144 = vector.load %arg12[%c9, %c0_71, %c0_72] : memref<12x8x120xbf16, #tpu.memory_space<vmem>>, vector<1x8x120xbf16>
    %145 = vector.shape_cast %144 : vector<1x8x120xbf16> to vector<8x120xbf16>
    %146 = vector.shape_cast %143 : vector<8x120xbf16> to vector<1x8x120xbf16>
    tpu.vector_store %arg12[%c9, %c0_71, %c0_72], %146 {strides = array<i32>} : memref<12x8x120xbf16, #tpu.memory_space<vmem>>, vector<1x8x120xbf16>,
    %c160 = arith.constant 160 : index
    %c0_73 = arith.constant 0 : index
    %147 = vector.load %arg11[%c160, %c0_73] : memref<192x240xf32, #tpu.memory_space<vmem>>, vector<8x240xf32>
    %c168 = arith.constant 168 : index
    %c0_74 = arith.constant 0 : index
    %148 = vector.load %arg11[%c168, %c0_74] : memref<192x240xf32, #tpu.memory_space<vmem>>, vector<8x240xf32>
    %149 = arith.maximumf %147, %148 : vector<8x240xf32>
    %150 = vector.extract_strided_slice %149 {offsets = [0, 0], sizes = [8, 120], strides = [1, 1]} : vector<8x240xf32> to vector<8x120xf32>
    %151 = vector.extract_strided_slice %149 {offsets = [0, 120], sizes = [8, 120], strides = [1, 1]} : vector<8x240xf32> to vector<8x120xf32>
    %152 = arith.maximumf %150, %151 : vector<8x120xf32>
    %153 = arith.addf %152, %16 : vector<8x120xf32>
    %cst_75 = arith.constant 0.000000e+00 : f32
    %154 = vector.broadcast %cst_75 : f32 to vector<8x120xf32>
    %155 = arith.maximumf %153, %154 : vector<8x120xf32>
    %156 = arith.truncf %155 : vector<8x120xf32> to vector<8x120xbf16>
    %c10 = arith.constant 10 : index
    %c0_76 = arith.constant 0 : index
    %c0_77 = arith.constant 0 : index
    %157 = vector.load %arg12[%c10, %c0_76, %c0_77] : memref<12x8x120xbf16, #tpu.memory_space<vmem>>, vector<1x8x120xbf16>
    %158 = vector.shape_cast %157 : vector<1x8x120xbf16> to vector<8x120xbf16>
    %159 = vector.shape_cast %156 : vector<8x120xbf16> to vector<1x8x120xbf16>
    tpu.vector_store %arg12[%c10, %c0_76, %c0_77], %159 {strides = array<i32>} : memref<12x8x120xbf16, #tpu.memory_space<vmem>>, vector<1x8x120xbf16>,
    %c176 = arith.constant 176 : index
    %c0_78 = arith.constant 0 : index
    %160 = vector.load %arg11[%c176, %c0_78] : memref<192x240xf32, #tpu.memory_space<vmem>>, vector<8x240xf32>
    %c184 = arith.constant 184 : index
    %c0_79 = arith.constant 0 : index
    %161 = vector.load %arg11[%c184, %c0_79] : memref<192x240xf32, #tpu.memory_space<vmem>>, vector<8x240xf32>
    %162 = arith.maximumf %160, %161 : vector<8x240xf32>
    %163 = vector.extract_strided_slice %162 {offsets = [0, 0], sizes = [8, 120], strides = [1, 1]} : vector<8x240xf32> to vector<8x120xf32>
    %164 = vector.extract_strided_slice %162 {offsets = [0, 120], sizes = [8, 120], strides = [1, 1]} : vector<8x240xf32> to vector<8x120xf32>
    %165 = arith.maximumf %163, %164 : vector<8x120xf32>
    %166 = arith.addf %165, %16 : vector<8x120xf32>
    %cst_80 = arith.constant 0.000000e+00 : f32
    %167 = vector.broadcast %cst_80 : f32 to vector<8x120xf32>
    %168 = arith.maximumf %166, %167 : vector<8x120xf32>
    %169 = arith.truncf %168 : vector<8x120xf32> to vector<8x120xbf16>
    %c11 = arith.constant 11 : index
    %c0_81 = arith.constant 0 : index
    %c0_82 = arith.constant 0 : index
    %170 = vector.load %arg12[%c11, %c0_81, %c0_82] : memref<12x8x120xbf16, #tpu.memory_space<vmem>>, vector<1x8x120xbf16>
    %171 = vector.shape_cast %170 : vector<1x8x120xbf16> to vector<8x120xbf16>
    %172 = vector.shape_cast %169 : vector<8x120xbf16> to vector<1x8x120xbf16>
    tpu.vector_store %arg12[%c11, %c0_81, %c0_82], %172 {strides = array<i32>} : memref<12x8x120xbf16, #tpu.memory_space<vmem>>, vector<1x8x120xbf16>,
    %c0_83 = arith.constant 0 : index
    %c0_84 = arith.constant 0 : index
    %c0_85 = arith.constant 0 : index
    %173 = vector.load %arg12[%c0_83, %c0_84, %c0_85] : memref<12x8x120xbf16, #tpu.memory_space<vmem>>, vector<8x8x120xbf16>
    %174 = vector.shape_cast %173 : vector<8x8x120xbf16> to vector<64x120xbf16>
    %c1_86 = arith.constant 1 : index
    %c0_87 = arith.constant 0 : index
    %c0_88 = arith.constant 0 : index
    %175 = vector.load %arg12[%c1_86, %c0_87, %c0_88] : memref<12x8x120xbf16, #tpu.memory_space<vmem>>, vector<8x8x120xbf16>
    %176 = vector.shape_cast %175 : vector<8x8x120xbf16> to vector<64x120xbf16>
    %c2_89 = arith.constant 2 : index
    %c0_90 = arith.constant 0 : index
    %c0_91 = arith.constant 0 : index
    %177 = vector.load %arg12[%c2_89, %c0_90, %c0_91] : memref<12x8x120xbf16, #tpu.memory_space<vmem>>, vector<8x8x120xbf16>
    %178 = vector.shape_cast %177 : vector<8x8x120xbf16> to vector<64x120xbf16>
    %c3_92 = arith.constant 3 : index
    %c0_93 = arith.constant 0 : index
    %c0_94 = arith.constant 0 : index
    %179 = vector.load %arg12[%c3_92, %c0_93, %c0_94] : memref<12x8x120xbf16, #tpu.memory_space<vmem>>, vector<8x8x120xbf16>
    %180 = vector.shape_cast %179 : vector<8x8x120xbf16> to vector<64x120xbf16>
    %c4_95 = arith.constant 4 : index
    %c0_96 = arith.constant 0 : index
    %c0_97 = arith.constant 0 : index
    %181 = vector.load %arg12[%c4_95, %c0_96, %c0_97] : memref<12x8x120xbf16, #tpu.memory_space<vmem>>, vector<8x8x120xbf16>
    %182 = vector.shape_cast %181 : vector<8x8x120xbf16> to vector<64x120xbf16>
    %183 = tpu.concatenate %174, %176, %178, %180, %182 in 1 : vector<64x120xbf16>, vector<64x120xbf16>, vector<64x120xbf16>, vector<64x120xbf16>, vector<64x120xbf16> -> vector<64x600xbf16>
    %c0_98 = arith.constant 0 : index
    %c0_99 = arith.constant 0 : index
    %184 = vector.load %arg4[%c0_98, %c0_99] : memref<600x160xbf16, #tpu.memory_space<vmem>>, vector<600x160xbf16>
    %cst_100 = arith.constant dense<0.000000e+00> : vector<64x160xf32>
    %185 = tpu.matmul %183, %184, %cst_100 {dimension_numbers = #tpu.dot_dimension_numbers<[1], [0], [0], [1], [0, 0, 1, 1], [], []>} : vector<64x600xbf16>, vector<600x160xbf16>, vector<64x160xf32> -> vector<64x160xf32>
    %c0_101 = arith.constant 0 : index
    %c0_102 = arith.constant 0 : index
    %186 = vector.load %arg13[%c0_101, %c0_102] : memref<64x160xf32, #tpu.memory_space<vmem>>, vector<64x160xf32>
    tpu.vector_store %arg13[%c0_101, %c0_102], %185 {strides = array<i32>} : memref<64x160xf32, #tpu.memory_space<vmem>>, vector<64x160xf32>,
    %c0_103 = arith.constant 0 : index
    %c0_104 = arith.constant 0 : index
    %187 = vector.load %arg5[%c0_103, %c0_104] : memref<1x80xf32, #tpu.memory_space<vmem>>, vector<1x80xf32>
    %188 = vector.shape_cast %187 : vector<1x80xf32> to vector<1x80xf32>
    %189 = vector.broadcast %188 : vector<1x80xf32> to vector<8x80xf32>
    %c0_105 = arith.constant 0 : index
    %c0_106 = arith.constant 0 : index
    %190 = vector.load %arg13[%c0_105, %c0_106] : memref<64x160xf32, #tpu.memory_space<vmem>>, vector<8x160xf32>
    %c8_107 = arith.constant 8 : index
    %c0_108 = arith.constant 0 : index
    %191 = vector.load %arg13[%c8_107, %c0_108] : memref<64x160xf32, #tpu.memory_space<vmem>>, vector<8x160xf32>
    %192 = arith.maximumf %190, %191 : vector<8x160xf32>
    %193 = vector.extract_strided_slice %192 {offsets = [0, 0], sizes = [8, 80], strides = [1, 1]} : vector<8x160xf32> to vector<8x80xf32>
    %194 = vector.extract_strided_slice %192 {offsets = [0, 80], sizes = [8, 80], strides = [1, 1]} : vector<8x160xf32> to vector<8x80xf32>
    %195 = arith.maximumf %193, %194 : vector<8x80xf32>
    %196 = arith.addf %195, %189 : vector<8x80xf32>
    %cst_109 = arith.constant 0.000000e+00 : f32
    %197 = vector.broadcast %cst_109 : f32 to vector<8x80xf32>
    %198 = arith.maximumf %196, %197 : vector<8x80xf32>
    %199 = arith.truncf %198 : vector<8x80xf32> to vector<8x80xbf16>
    %c16_110 = arith.constant 16 : index
    %c0_111 = arith.constant 0 : index
    %200 = vector.load %arg13[%c16_110, %c0_111] : memref<64x160xf32, #tpu.memory_space<vmem>>, vector<8x160xf32>
    %c24_112 = arith.constant 24 : index
    %c0_113 = arith.constant 0 : index
    %201 = vector.load %arg13[%c24_112, %c0_113] : memref<64x160xf32, #tpu.memory_space<vmem>>, vector<8x160xf32>
    %202 = arith.maximumf %200, %201 : vector<8x160xf32>
    %203 = vector.extract_strided_slice %202 {offsets = [0, 0], sizes = [8, 80], strides = [1, 1]} : vector<8x160xf32> to vector<8x80xf32>
    %204 = vector.extract_strided_slice %202 {offsets = [0, 80], sizes = [8, 80], strides = [1, 1]} : vector<8x160xf32> to vector<8x80xf32>
    %205 = arith.maximumf %203, %204 : vector<8x80xf32>
    %206 = arith.addf %205, %189 : vector<8x80xf32>
    %cst_114 = arith.constant 0.000000e+00 : f32
    %207 = vector.broadcast %cst_114 : f32 to vector<8x80xf32>
    %208 = arith.maximumf %206, %207 : vector<8x80xf32>
    %209 = arith.truncf %208 : vector<8x80xf32> to vector<8x80xbf16>
    %c32_115 = arith.constant 32 : index
    %c0_116 = arith.constant 0 : index
    %210 = vector.load %arg13[%c32_115, %c0_116] : memref<64x160xf32, #tpu.memory_space<vmem>>, vector<8x160xf32>
    %c40_117 = arith.constant 40 : index
    %c0_118 = arith.constant 0 : index
    %211 = vector.load %arg13[%c40_117, %c0_118] : memref<64x160xf32, #tpu.memory_space<vmem>>, vector<8x160xf32>
    %212 = arith.maximumf %210, %211 : vector<8x160xf32>
    %213 = vector.extract_strided_slice %212 {offsets = [0, 0], sizes = [8, 80], strides = [1, 1]} : vector<8x160xf32> to vector<8x80xf32>
    %214 = vector.extract_strided_slice %212 {offsets = [0, 80], sizes = [8, 80], strides = [1, 1]} : vector<8x160xf32> to vector<8x80xf32>
    %215 = arith.maximumf %213, %214 : vector<8x80xf32>
    %216 = arith.addf %215, %189 : vector<8x80xf32>
    %cst_119 = arith.constant 0.000000e+00 : f32
    %217 = vector.broadcast %cst_119 : f32 to vector<8x80xf32>
    %218 = arith.maximumf %216, %217 : vector<8x80xf32>
    %219 = arith.truncf %218 : vector<8x80xf32> to vector<8x80xbf16>
    %c48_120 = arith.constant 48 : index
    %c0_121 = arith.constant 0 : index
    %220 = vector.load %arg13[%c48_120, %c0_121] : memref<64x160xf32, #tpu.memory_space<vmem>>, vector<8x160xf32>
    %c56_122 = arith.constant 56 : index
    %c0_123 = arith.constant 0 : index
    %221 = vector.load %arg13[%c56_122, %c0_123] : memref<64x160xf32, #tpu.memory_space<vmem>>, vector<8x160xf32>
    %222 = arith.maximumf %220, %221 : vector<8x160xf32>
    %223 = vector.extract_strided_slice %222 {offsets = [0, 0], sizes = [8, 80], strides = [1, 1]} : vector<8x160xf32> to vector<8x80xf32>
    %224 = vector.extract_strided_slice %222 {offsets = [0, 80], sizes = [8, 80], strides = [1, 1]} : vector<8x160xf32> to vector<8x80xf32>
    %225 = arith.maximumf %223, %224 : vector<8x80xf32>
    %226 = arith.addf %225, %189 : vector<8x80xf32>
    %cst_124 = arith.constant 0.000000e+00 : f32
    %227 = vector.broadcast %cst_124 : f32 to vector<8x80xf32>
    %228 = arith.maximumf %226, %227 : vector<8x80xf32>
    %229 = arith.truncf %228 : vector<8x80xf32> to vector<8x80xbf16>
    %230 = tpu.concatenate %199, %209, %219, %229 in 1 : vector<8x80xbf16>, vector<8x80xbf16>, vector<8x80xbf16>, vector<8x80xbf16> -> vector<8x320xbf16>
    %c0_125 = arith.constant 0 : index
    %c0_126 = arith.constant 0 : index
    %231 = vector.load %arg6[%c0_125, %c0_126] : memref<320x50xbf16, #tpu.memory_space<vmem>>, vector<320x50xbf16>
    %cst_127 = arith.constant dense<0.000000e+00> : vector<8x50xf32>
    %232 = tpu.matmul %230, %231, %cst_127 {dimension_numbers = #tpu.dot_dimension_numbers<[1], [0], [0], [1], [0, 0, 1, 1], [], []>} : vector<8x320xbf16>, vector<320x50xbf16>, vector<8x50xf32> -> vector<8x50xf32>
    %c0_128 = arith.constant 0 : index
    %c0_129 = arith.constant 0 : index
    %233 = vector.load %arg7[%c0_128, %c0_129] : memref<1x50xf32, #tpu.memory_space<vmem>>, vector<1x50xf32>
    %234 = vector.broadcast %233 : vector<1x50xf32> to vector<8x50xf32>
    %235 = arith.addf %232, %234 : vector<8x50xf32>
    %cst_130 = arith.constant 0.000000e+00 : f32
    %236 = vector.broadcast %cst_130 : f32 to vector<8x50xf32>
    %237 = arith.maximumf %235, %236 : vector<8x50xf32>
    %238 = arith.truncf %237 : vector<8x50xf32> to vector<8x50xbf16>
    %c0_131 = arith.constant 0 : index
    %c0_132 = arith.constant 0 : index
    %239 = vector.load %arg8[%c0_131, %c0_132] : memref<50x10xbf16, #tpu.memory_space<vmem>>, vector<50x10xbf16>
    %cst_133 = arith.constant dense<0.000000e+00> : vector<8x10xf32>
    %240 = tpu.matmul %238, %239, %cst_133 {dimension_numbers = #tpu.dot_dimension_numbers<[1], [0], [0], [1], [0, 0, 1, 1], [], []>} : vector<8x50xbf16>, vector<50x10xbf16>, vector<8x10xf32> -> vector<8x10xf32>
    %c0_134 = arith.constant 0 : index
    %c0_135 = arith.constant 0 : index
    %241 = vector.load %arg9[%c0_134, %c0_135] : memref<1x10xf32, #tpu.memory_space<vmem>>, vector<1x10xf32>
    %242 = vector.broadcast %241 : vector<1x10xf32> to vector<8x10xf32>
    %243 = arith.addf %240, %242 : vector<8x10xf32>
    %c0_136 = arith.constant 0 : index
    %c0_137 = arith.constant 0 : index
    %244 = vector.load %arg10[%c0_136, %c0_137] : memref<8x10xf32, #tpu.memory_space<vmem>>, vector<8x10xf32>
    tpu.vector_store %arg10[%c0_136, %c0_137], %243 {strides = array<i32>} : memref<8x10xf32, #tpu.memory_space<vmem>>, vector<8x10xf32>,
    return
  }
  func.func @transform_0(%arg0: i32) -> (i32, i32, i32) {
    %c0_i32 = arith.constant 0 : i32
    %c0_i32_0 = arith.constant 0 : i32
    %c0_i32_1 = arith.constant 0 : i32
    return %c0_i32, %arg0, %c0_i32_0 : i32, i32, i32
  }
  func.func @transform_1(%arg0: i32) -> (i32, i32) {
    %c0_i32 = arith.constant 0 : i32
    %c0_i32_0 = arith.constant 0 : i32
    %c0_i32_1 = arith.constant 0 : i32
    return %c0_i32, %c0_i32_0 : i32, i32
  }
  func.func @transform_2(%arg0: i32) -> (i32, i32) {
    %c0_i32 = arith.constant 0 : i32
    %c0_i32_0 = arith.constant 0 : i32
    %c0_i32_1 = arith.constant 0 : i32
    return %c0_i32, %c0_i32_0 : i32, i32
  }
  func.func @transform_3(%arg0: i32) -> (i32, i32) {
    %c0_i32 = arith.constant 0 : i32
    %c0_i32_0 = arith.constant 0 : i32
    %c0_i32_1 = arith.constant 0 : i32
    return %c0_i32, %c0_i32_0 : i32, i32
  }
  func.func @transform_4(%arg0: i32) -> (i32, i32) {
    %c0_i32 = arith.constant 0 : i32
    %c0_i32_0 = arith.constant 0 : i32
    %c0_i32_1 = arith.constant 0 : i32
    return %c0_i32, %c0_i32_0 : i32, i32
  }
  func.func @transform_5(%arg0: i32) -> (i32, i32) {
    %c0_i32 = arith.constant 0 : i32
    %c0_i32_0 = arith.constant 0 : i32
    %c0_i32_1 = arith.constant 0 : i32
    return %c0_i32, %c0_i32_0 : i32, i32
  }
  func.func @transform_6(%arg0: i32) -> (i32, i32) {
    %c0_i32 = arith.constant 0 : i32
    %c0_i32_0 = arith.constant 0 : i32
    %c0_i32_1 = arith.constant 0 : i32
    return %c0_i32, %c0_i32_0 : i32, i32
  }
  func.func @transform_7(%arg0: i32) -> (i32, i32) {
    %c0_i32 = arith.constant 0 : i32
    %c0_i32_0 = arith.constant 0 : i32
    %c0_i32_1 = arith.constant 0 : i32
    return %c0_i32, %c0_i32_0 : i32, i32
  }
  func.func @transform_8(%arg0: i32) -> (i32, i32) {
    %c0_i32 = arith.constant 0 : i32
    %c0_i32_0 = arith.constant 0 : i32
    %c0_i32_1 = arith.constant 0 : i32
    return %c0_i32, %c0_i32_0 : i32, i32
  }
  func.func @transform_9(%arg0: i32) -> (i32, i32) {
    %c0_i32 = arith.constant 0 : i32
    %c0_i32_0 = arith.constant 0 : i32
    return %arg0, %c0_i32 : i32, i32
  }
}

</mosaic_0001>

<bundles_post_ra>
// kernel: mnist_cnn_forward.1
= control target key start
LH: loop header
LB: loop body
LE: loop exit
PB: predicated region body
PF: predicated region fallthrough
CT: control target
= control target key end

     0   :  { %s3297_s13 = smov 28   ;;  %s3298_s16 = smov 84   ;;  %vm808_vm0 = vcmask 1045504   ;;  %vm553_vm1 = vcmask 228352   ;;  %vm590_vm2 = vcmask 457728   ;;  %vm783_vm3 = vcmask 97280   ;;  %s4240_s0 = inlined_call_operand.vmem [shape: bf16[28,8,28], index: 0, kind: input, shape index: {}]   ;;  %s4241_s1 = inlined_call_operand.vmem [shape: bf16[140,240], index: 1, kind: input, shape index: {}]   ;;  %s4242_s3 = inlined_call_operand.vmem [shape: bf16[600,160], index: 3, kind: input, shape index: {}]   ;;  %s4243_s2 = inlined_call_operand.vmem [shape: f32[1,120], index: 2, kind: input, shape index: {}]   ;;  %s4244_s5 = inlined_call_operand.vmem [shape: bf16[320,50], index: 5, kind: input, shape index: {}]   ;;  %s4245_s4 = inlined_call_operand.vmem [shape: f32[1,80], index: 4, kind: input, shape index: {}]   ;;  %s4246_s7 = inlined_call_operand.vmem [shape: bf16[50,10], index: 7, kind: input, shape index: {}]   ;;  %s4247_s6 = inlined_call_operand.vmem [shape: f32[1,50], index: 6, kind: input, shape index: {}]   ;;  %s4248_s8 = inlined_call_operand.vmem [shape: f32[1,10], index: 8, kind: input, shape index: {}]   ;;  %s4249_s9 = inlined_call_operand.vmem [shape: f32[8,10], index: 9, kind: output, shape index: {}]  }
   0x1   :  { %v3053_v0 = vld [vmem:[%s4240_s0 + $0x4] sm:$0xff]   ;;  %v3054_v1 = vld [vmem:[%s4240_s0 + $0xc] sm:$0xff]   ;;  %s3299_s19 = smov 56   ;;  %s3300_s22 = smov 112   ;;  %v3059_v6 = vld [vmem:[%s4240_s0 + $0x14] sm:$0xff]   ;;  %vm615_vm4 = vcmask 687104  }
   0x2   :  { %277 = vrot.lane.b32.xlu0 %v3053_v0, %s3297_s13  ;;  %v3055_v2 = vld [vmem:[%s4240_s0 + $0x8] sm:$0xff]   ;;  %445 = vrot.lane.b32.xlu1 %v3054_v1, %s3298_s16  ;;  %v3056_v3 = vld [vmem:[%s4240_s0 + $0x10] sm:$0xff]   ;;  %vm640_vm5 = vcmask 916480   ;;  %vm1035_vm6 = vcmask 64512   ;;  %vm1042_vm7 = vcmask 977920   ;;  %s3302_s28 = smov 120  }
   0x3   :  { %v3057_v4 = vld [vmem:[%s4240_s0 + $0xc] sm:$0xff]   ;;  %v3060_v7 = vld [vmem:[%s4240_s0 + $0x18] sm:$0xff]   ;;  %v3064_v11 = vld [vmem:[%s4240_s0 + $0x20] sm:$0xff]   ;;  %s3304_s29 = smov 96   ;;  %vm1436_vm8 = vcmask 982016   ;;  %vm1478_vm9 = vcmask 785408  }
   0x4   :  { %v3058_v5 = vld [vmem:[%s4240_s0 + $0x10] sm:$0xff]   ;;  %v3062_v9 = vld [vmem:[%s4240_s0 + $0x18] sm:$0xff]   ;;  %v3066_v13 = vld [vmem:[%s4240_s0 + $0x20] sm:$0xff]   ;;  %vm1465_vm10 = vcmask 850944   ;;  %vm1950_vm11 = vcmask 1043456   ;;  %vm1941_vm12 = vcmask 719872  }
   0x5   :  { %v3061_v8 = vld [vmem:[%s4240_s0 + $0x14] sm:$0xff]   ;;  %v3063_v10 = vld [vmem:[%s4240_s0 + $0x1c] sm:$0xff]   ;;  %v3067_v14 = vld [vmem:[%s4240_s0 + $0x24] sm:$0xff]   ;;  %vm2177_vm13 = vcmask 261120   ;;  %vm2212_vm14 = vcmask 392192   ;;  %s3307_s14 = smov 80  }
   0x6   :  { %361 = vrot.lane.b32.xlu0 %v3055_v2, %s3299_s19  ;;  %529 = vrot.lane.b32.xlu1 %v3056_v3, %s3300_s22  ;;  %v3065_v12 = vld [vmem:[%s4240_s0 + $0x1c] sm:$0xff]   ;;  %v3068_v15 = vld [vmem:[%s4240_s0 + $0x28] sm:$0xff]   ;;  %vm2282_vm15 = vcmask 654336  }
   0x7   :  { %v3069_v16 = vld [vmem:[%s4240_s0 + $0x24] sm:$0xff]   ;;  %v3071_v18 = vld [vmem:[%s4240_s0 + $0x2c] sm:$0xff]   ;;  %v3075_v24 = vld [vmem:[%s4240_s0 + $0x34] sm:$0xff]  }
   0x8   :  { %v3070_v17 = vld [vmem:[%s4240_s0 + $0x28] sm:$0xff]   ;;  %v3072_v19 = vld [vmem:[%s4240_s0 + $0x30] sm:$0xff]   ;;  %v3076_v26 = vld [vmem:[%s4240_s0 + $0x38] sm:$0xff]  }
   0x9   :  { %v3073_v20 = vld [vmem:[%s4240_s0 + $0x2c] sm:$0xff]   ;;  %v3095_v23 = vld [vmem:[%s4241_s1] ss:$8 sps:$4 sm:$0xff]   ;;  %v3096_v25 = vld [vmem:[%s4241_s1 + $0x14] ss:$8 sps:$4 sm:$0xff]  }
   0xa   :  { %279 = vrot.lane.b32.xlu0 %v3057_v4, %s3297_s13  ;;  %363 = vrot.lane.b32.xlu1 %v3058_v5, %s3299_s19  ;;  %v3074_v21 = vld [vmem:[%s4240_s0 + $0x30] sm:$0xff]   ;;  %v3093_v22 = vld [vmem:[%s4241_s1 + $0x4] ss:$8 sps:$4 sm:$0xff]  }
   0xb   :  { %815 = vmatprep.subr.bf16.mxu0 %v3093_v22  ;;  %v3098_v27 = vld [vmem:[%s4241_s1 + $0x10] ss:$8 sps:$4 sm:$0xff]   ;;  %v3099_v28 = vld [vmem:[%s4241_s1 + $0x24] ss:$8 sps:$4 sm:$0xff]   ;;  %v3101_v31 = vld [vmem:[%s4241_s1 + $0x20] ss:$8 sps:$4 sm:$0xff]  }
   0xc   :  { %816 = vmatpush1.bf16.msra.mxu0 %v3095_v23  ;;  %v3077_v29 = vld [vmem:[%s4240_s0 + $0x34] sm:$0xff]   ;;  %v3079_v33 = vld [vmem:[%s4240_s0 + $0x3c] sm:$0xff]   ;;  %v3105_v36 = vld [vmem:[%s4241_s1 + $0x44] ss:$8 sps:$4 sm:$0xff]  }
   0xd   :  { %817 = vmatprep.subr.bf16.mxu0 %v3096_v25  ;;  %v3078_v30 = vld [vmem:[%s4240_s0 + $0x38] sm:$0xff]   ;;  %v3080_v34 = vld [vmem:[%s4240_s0 + $0x40] sm:$0xff]   ;;  %v3084_v42 = vld [vmem:[%s4240_s0 + $0x48] sm:$0xff]  }
   0xe   :  { %447 = vrot.lane.b32.xlu0 %v3059_v6, %s3298_s16  ;;  %531 = vrot.lane.b32.xlu1 %v3060_v7, %s3300_s22  ;;  %v3102_v32 = vld [vmem:[%s4241_s1 + $0x34] ss:$8 sps:$4 sm:$0xff]   ;;  %v3104_v35 = vld [vmem:[%s4241_s1 + $0x30] ss:$8 sps:$4 sm:$0xff]  }
   0xf   :  { %v3081_v37 = vld [vmem:[%s4240_s0 + $0x3c] sm:$0xff]   ;;  %v3083_v41 = vld [vmem:[%s4240_s0 + $0x44] sm:$0xff]   ;;  %v3110_v43 = vld [vmem:[%s4241_s1 + $0x50] ss:$8 sps:$4 sm:$0xff]  }
  0x10   :  { %818 = vmatpush1.bf16.msra.mxu0 %v3098_v27  ;;  %v3082_v38 = vld [vmem:[%s4240_s0 + $0x40] sm:$0xff]   ;;  %v3108_v40 = vld [vmem:[%s4241_s1 + $0x54] ss:$8 sps:$4 sm:$0xff]   ;;  %v3086_v46 = vld [vmem:[%s4240_s0 + $0x48] sm:$0xff]  }
  0x11   :  { %819 = vmatprep.subr.bf16.mxu0 %v3099_v28  ;;  %v3107_v39 = vld [vmem:[%s4241_s1 + $0x40] ss:$8 sps:$4 sm:$0xff]   ;;  %v3111_v44 = vld [vmem:[%s4241_s1 + $0x64] ss:$8 sps:$4 sm:$0xff]   ;;  %v3114_v48 = vld [vmem:[%s4241_s1 + $0x74] ss:$8 sps:$4 sm:$0xff]  }
  0x12   :  { %281 = vrot.lane.b32.xlu0 %v3061_v8, %s3297_s13  ;;  %365 = vrot.lane.b32.xlu1 %v3062_v9, %s3299_s19  ;;  %v3085_v45 = vld [vmem:[%s4240_s0 + $0x44] sm:$0xff]   ;;  %v3087_v49 = vld [vmem:[%s4240_s0 + $0x4c] sm:$0xff]  }
  0x13   :  { %v3113_v47 = vld [vmem:[%s4241_s1 + $0x60] ss:$8 sps:$4 sm:$0xff]   ;;  %v3088_v50 = vld [vmem:[%s4240_s0 + $0x50] sm:$0xff]   ;;  %v3118_v51 = vld [vmem:[%s4241_s1 + $0x84] ss:$8 sps:$4 sm:$0x3f]  }
  0x14   :  { %820 = vmatpush1.bf16.msra.mxu0 %v3101_v31  ;;  %v3120_v52 = vld [vmem:[%s4241_s1 + $0x80] ss:$8 sps:$4 sm:$0x3f]   ;;  %v3117_v53 = vld [vmem:[%s4241_s1 + $0x70] ss:$8 sps:$4 sm:$0xff]  }
  0x15   :  { %821 = vmatprep.subr.bf16.mxu0 %v3102_v32  ;;  %v3089_v54 = vld [vmem:[%s4240_s0 + $0x4c] sm:$0xff]   ;;  %v810_v56 = vsel %vm808_vm0, %v3120_v52, 0  ;;  %v3091_v57 = vld [vmem:[%s4240_s0 + $0x54] sm:$0xff]   ;;  %v3128_v61 = vld [vmem:[%s4240_s0 + $0x5c] sm:$0xff]  }
  0x16   :  { %449 = vrot.lane.b32.xlu0 %v3063_v10, %s3298_s16  ;;  %533 = vrot.lane.b32.xlu1 %v3064_v11, %s3300_s22  ;;  %v3090_v55 = vld [vmem:[%s4240_s0 + $0x50] sm:$0xff]   ;;  %v3092_v58 = vld [vmem:[%s4240_s0 + $0x58] sm:$0xff]  }
  0x17   :  { %v3125_v59 = vld [vmem:[%s4240_s0 + $0x54] sm:$0xff]   ;;  %v3129_v62 = vld [vmem:[%s4240_s0 + $0x60] sm:$0xff]   ;;  %v3134_v2 = vld [vmem:[%s4240_s0 + $0x68] sm:$0xff]  }
  0x18   :  { %822 = vmatpush1.bf16.msra.mxu0 %v3104_v35  ;;  %v3126_v60 = vld [vmem:[%s4240_s0 + $0x58] sm:$0xff]   ;;  %v3131_v0 = vld [vmem:[%s4240_s0 + $0x60] sm:$0xff]   ;;  %v3121_v10 = vld [vmem:[%s4240_s0 + $0x8] sm:$0xff]  }
  0x19   :  { %823 = vmatprep.subr.bf16.mxu0 %v3105_v36  ;;  %v3130_v63 = vld [vmem:[%s4240_s0 + $0x5c] sm:$0xff]   ;;  %v3133_v1 = vld [vmem:[%s4240_s0 + $0x64] sm:$0xff]  }
  0x1a   :  { %283 = vrot.lane.b32.xlu0 %v3065_v12, %s3297_s13  ;;  %367 = vrot.lane.b32.xlu1 %v3066_v13, %s3299_s19  ;;  %v3116_v4 = vld [vmem:[%s4240_s0] sm:$0xff]  }
  0x1c   :  { %824 = vmatpush1.bf16.msra.mxu0 %v3107_v39 }
  0x1d   :  { %825 = vmatprep.subr.bf16.mxu0 %v3108_v40 }
  0x1e   :  { %451 = vrot.lane.b32.xlu0 %v3067_v14, %s3298_s16  ;;  %535 = vrot.lane.b32.xlu1 %v3068_v15, %s3300_s22 }
  0x20   :  { %826 = vmatpush1.bf16.msra.mxu0 %v3110_v43 }
  0x21   :  { %827 = vmatprep.subr.bf16.mxu0 %v3111_v44 }
  0x22   :  { %285 = vrot.lane.b32.xlu0 %v3069_v16, %s3297_s13  ;;  %369 = vrot.lane.b32.xlu1 %v3070_v17, %s3299_s19 }
  0x24   :  { %828 = vmatpush1.bf16.msra.mxu0 %v3113_v47  ;;  %v3127_v47 = vld [vmem:[%s4240_s0 + $0x28] sm:$0xff]  }
  0x25   :  { %829 = vmatprep.subr.bf16.mxu0 %v3114_v48 }
  0x26   :  { %453 = vrot.lane.b32.xlu0 %v3071_v18, %s3298_s16  ;;  %537 = vrot.lane.b32.xlu1 %v3072_v19, %s3300_s22 }
  0x28   :  { %830 = vmatpush1.bf16.msra.mxu0 %v3117_v53 }
  0x29   :  { %2807 = vmatprep.subr.msk.bf16.mxu0 %vm808_vm0, %v3118_v51  ;;  %vm3310_vm0 = vmmov 0  }
  0x2a   :  { %287 = vrot.lane.b32.xlu0 %v3073_v20, %s3297_s13  ;;  %371 = vrot.lane.b32.xlu1 %v3074_v21, %s3299_s19  ;;  %v3122_v20 = vld [vmem:[%s4240_s0 + $0x10] sm:$0xff]  }
  0x2c   :  { %832 = vmatpush1.bf16.msra.mxu0 %v810_v56  ;;  %v3132_v56 = vld [vmem:[%s4240_s0 + $0x30] sm:$0xff]  }
  0x2e   :  { %455 = vrot.lane.b32.xlu0 %v3075_v24, %s3298_s16  ;;  %539 = vrot.lane.b32.xlu1 %v3076_v26, %s3300_s22 }
  0x32   :  { %289 = vrot.lane.b32.xlu0 %v3077_v29, %s3297_s13  ;;  %373 = vrot.lane.b32.xlu1 %v3078_v30, %s3299_s19  ;;  %v3123_v29 = vld [vmem:[%s4240_s0 + $0x18] sm:$0xff]  }
  0x36   :  { %457 = vrot.lane.b32.xlu0 %v3079_v33, %s3298_s16  ;;  %541 = vrot.lane.b32.xlu1 %v3080_v34, %s3300_s22 }
  0x3a   :  { %291 = vrot.lane.b32.xlu0 %v3081_v37, %s3297_s13  ;;  %375 = vrot.lane.b32.xlu1 %v3082_v38, %s3299_s19  ;;  %v3124_v38 = vld [vmem:[%s4240_s0 + $0x20] sm:$0xff]  }
  0x3e   :  { %459 = vrot.lane.b32.xlu0 %v3083_v41, %s3298_s16  ;;  %543 = vrot.lane.b32.xlu1 %v3084_v42, %s3300_s22 }
  0x42   :  { %293 = vrot.lane.b32.xlu0 %v3085_v45, %s3297_s13  ;;  %377 = vrot.lane.b32.xlu1 %v3086_v46, %s3299_s19 }
  0x46   :  { %461 = vrot.lane.b32.xlu0 %v3087_v49, %s3298_s16  ;;  %545 = vrot.lane.b32.xlu1 %v3088_v50, %s3300_s22 }
  0x4a   :  { %295 = vrot.lane.b32.xlu0 %v3089_v54, %s3297_s13  ;;  %379 = vrot.lane.b32.xlu1 %v3090_v55, %s3299_s19 }
  0x4e   :  { %463 = vrot.lane.b32.xlu0 %v3091_v57, %s3298_s16  ;;  %547 = vrot.lane.b32.xlu1 %v3092_v58, %s3300_s22 }
  0x52   :  { %297 = vrot.lane.b32.xlu0 %v3125_v59, %s3297_s13  ;;  %381 = vrot.lane.b32.xlu1 %v3126_v60, %s3299_s19 }
  0x56   :  { %465 = vrot.lane.b32.xlu0 %v3128_v61, %s3298_s16  ;;  %549 = vrot.lane.b32.xlu1 %v3129_v62, %s3300_s22 }
  0x5a   :  { %299 = vrot.lane.b32.xlu0 %v3130_v63, %s3297_s13  ;;  %383 = vrot.lane.b32.xlu1 %v3131_v0, %s3299_s19 }
  0x5e   :  { %467 = vrot.lane.b32.xlu0 %v3133_v1, %s3298_s16  ;;  %551 = vrot.lane.b32.xlu1 %v3134_v2, %s3300_s22  ;;  %v3135_v1 = vld [vmem:[%s4240_s0 + $0x38] sm:$0xff]  }
  0x74   :  { %v278_v3 = vpop.permute.xlu0 %277  ;;  %v446_v5 = vpop.permute.xlu1 %445 }
  0x75   :  { %v556_v6 = vsel %vm553_vm1, %v3116_v4, %v278_v3 }
  0x78   :  { %v362_v7 = vpop.permute.xlu0 %361  ;;  %v530_v9 = vpop.permute.xlu1 %529 }
  0x79   :  { %v592_v8 = vsel %vm590_vm2, %v556_v6, %v362_v7  ;;  %2808 = vmatprep.mubr.msk.bf16.mxu0 %vm783_vm3, %v530_v9 }
  0x7a   :  { %v617_v11 = vsel %vm615_vm4, %v592_v8, %v446_v5 }
  0x7b   :  { %v642_v12 = vsel %vm640_vm5, %v617_v11, %v530_v9 }
  0x7c   :  { %v280_v13 = vpop.permute.xlu0 %279  ;;  %848 = vmatmul.mubr.bf16.vlgmr.msra.gmra.mrb[0].mxu0 %v642_v12  ;;  %v364_v15 = vpop.permute.xlu1 %363 }
  0x7d   :  { %v559_v14 = vsel %vm553_vm1, %v3121_v10, %v280_v13  ;;  %v3136_v10 = vld [vmem:[%s4240_s0 + $0x40] sm:$0xff]  }
  0x7e   :  { %v594_v16 = vsel %vm590_vm2, %v559_v14, %v364_v15 }
  0x80   :  { %v448_v17 = vpop.permute.xlu0 %447  ;;  %v532_v19 = vpop.permute.xlu1 %531 }
  0x81   :  { %v619_v18 = vsel %vm615_vm4, %v594_v16, %v448_v17  ;;  %2809 = vmatprep.mubr.msk.bf16.mxu0 %vm783_vm3, %v532_v19 }
  0x82   :  { %v645_v21 = vsel %vm640_vm5, %v619_v18, %v532_v19  ;;  %v3137_v19 = vld [vmem:[%s4240_s0 + $0x48] sm:$0xff]  }
  0x84   :  { %v282_v22 = vpop.permute.xlu0 %281  ;;  %858 = vmatmul.mubr.bf16.gmra.mrb[4].mxu0 %v645_v21  ;;  %v366_v24 = vpop.permute.xlu1 %365 }
  0x85   :  { %v562_v23 = vsel %vm553_vm1, %v3122_v20, %v282_v22 }
  0x86   :  { %v596_v25 = vsel %vm590_vm2, %v562_v23, %v366_v24 }
  0x88   :  { %v450_v26 = vpop.permute.xlu0 %449  ;;  %v534_v28 = vpop.permute.xlu1 %533 }
  0x89   :  { %v621_v27 = vsel %vm615_vm4, %v596_v25, %v450_v26  ;;  %2810 = vmatprep.mubr.msk.bf16.mxu0 %vm783_vm3, %v534_v28 }
  0x8a   :  { %v648_v30 = vsel %vm640_vm5, %v621_v27, %v534_v28  ;;  %v3138_v28 = vld [vmem:[%s4240_s0 + $0x50] sm:$0xff]  }
  0x8c   :  { %v284_v31 = vpop.permute.xlu0 %283  ;;  %868 = vmatmul.mubr.bf16.gmra.mrb[8].mxu0 %v648_v30  ;;  %v368_v33 = vpop.permute.xlu1 %367 }
  0x8d   :  { %v565_v32 = vsel %vm553_vm1, %v3123_v29, %v284_v31 }
  0x8e   :  { %v598_v34 = vsel %vm590_vm2, %v565_v32, %v368_v33 }
  0x90   :  { %v452_v35 = vpop.permute.xlu0 %451  ;;  %v536_v37 = vpop.permute.xlu1 %535 }
  0x91   :  { %v623_v36 = vsel %vm615_vm4, %v598_v34, %v452_v35  ;;  %2811 = vmatprep.mubr.msk.bf16.mxu0 %vm783_vm3, %v536_v37 }
  0x92   :  { %v651_v39 = vsel %vm640_vm5, %v623_v36, %v536_v37  ;;  %v3139_v37 = vld [vmem:[%s4240_s0 + $0x58] sm:$0xff]   ;;  %s3301_s0 = smov 8  }
  0x94   :  { %878 = vmatmul.mubr.bf16.gmra.mrb[12].mxu0 %v651_v39  ;;  %v286_v40 = vpop.permute.xlu0 %285  ;;  %v370_v42 = vpop.permute.xlu1 %369 }
  0x95   :  { %v568_v41 = vsel %vm553_vm1, %v3124_v38, %v286_v40 }
  0x96   :  { %v600_v43 = vsel %vm590_vm2, %v568_v41, %v370_v42 }
  0x98   :  { %v454_v44 = vpop.permute.xlu0 %453  ;;  %v538_v46 = vpop.permute.xlu1 %537 }
  0x99   :  { %v625_v45 = vsel %vm615_vm4, %v600_v43, %v454_v44  ;;  %2812 = vmatprep.mubr.msk.bf16.mxu0 %vm783_vm3, %v538_v46 }
  0x9a   :  { %v654_v48 = vsel %vm640_vm5, %v625_v45, %v538_v46 }
  0x9c   :  { %888 = vmatmul.mubr.bf16.gmra.mrb[16].mxu0 %v654_v48  ;;  %v288_v49 = vpop.permute.xlu0 %287  ;;  %v372_v51 = vpop.permute.xlu1 %371 }
  0x9d   :  { %v571_v50 = vsel %vm553_vm1, %v3127_v47, %v288_v49 }
  0x9e   :  { %v602_v52 = vsel %vm590_vm2, %v571_v50, %v372_v51 }
  0xa0   :  { %v456_v53 = vpop.permute.xlu0 %455  ;;  %v540_v55 = vpop.permute.xlu1 %539 }
  0xa1   :  { %v627_v54 = vsel %vm615_vm4, %v602_v52, %v456_v53  ;;  %2813 = vmatprep.mubr.msk.bf16.mxu0 %vm783_vm3, %v540_v55 }
  0xa2   :  { %v657_v57 = vsel %vm640_vm5, %v627_v54, %v540_v55 }
  0xa4   :  { %898 = vmatmul.mubr.bf16.gmra.mrb[20].mxu0 %v657_v57  ;;  %v290_v58 = vpop.permute.xlu0 %289  ;;  %v374_v60 = vpop.permute.xlu1 %373 }
  0xa5   :  { %v574_v59 = vsel %vm553_vm1, %v3132_v56, %v290_v58 }
  0xa6   :  { %v604_v61 = vsel %vm590_vm2, %v574_v59, %v374_v60 }
  0xa8   :  { %v458_v62 = vpop.permute.xlu0 %457  ;;  %v542_v0 = vpop.permute.xlu1 %541 }
  0xa9   :  { %v629_v63 = vsel %vm615_vm4, %v604_v61, %v458_v62  ;;  %2814 = vmatprep.mubr.msk.bf16.mxu0 %vm783_vm3, %v542_v0 }
  0xaa   :  { %v660_v2 = vsel %vm640_vm5, %v629_v63, %v542_v0 }
  0xac   :  { %908 = vmatmul.mubr.bf16.gmra.mrb[24].mxu0 %v660_v2  ;;  %v292_v3 = vpop.permute.xlu0 %291  ;;  %v376_v5 = vpop.permute.xlu1 %375 }
  0xad   :  { %v577_v4 = vsel %vm553_vm1, %v3135_v1, %v292_v3 }
  0xae   :  { %v606_v6 = vsel %vm590_vm2, %v577_v4, %v376_v5 }
  0xb0   :  { %v460_v7 = vpop.permute.xlu0 %459  ;;  %v544_v9 = vpop.permute.xlu1 %543 }
  0xb1   :  { %v631_v8 = vsel %vm615_vm4, %v606_v6, %v460_v7  ;;  %2815 = vmatprep.mubr.msk.bf16.mxu0 %vm783_vm3, %v544_v9 }
  0xb2   :  { %v663_v11 = vsel %vm640_vm5, %v631_v8, %v544_v9 }
  0xb4   :  { %918 = vmatmul.mubr.bf16.gmra.mrb[28].mxu0 %v663_v11  ;;  %v294_v12 = vpop.permute.xlu0 %293  ;;  %v378_v14 = vpop.permute.xlu1 %377 }
  0xb5   :  { %v580_v13 = vsel %vm553_vm1, %v3136_v10, %v294_v12 }
  0xb6   :  { %v608_v15 = vsel %vm590_vm2, %v580_v13, %v378_v14 }
  0xb8   :  { %v462_v16 = vpop.permute.xlu0 %461  ;;  %v546_v18 = vpop.permute.xlu1 %545 }
  0xb9   :  { %v633_v17 = vsel %vm615_vm4, %v608_v15, %v462_v16  ;;  %2816 = vmatprep.mubr.msk.bf16.mxu0 %vm783_vm3, %v546_v18 }
  0xba   :  { %v666_v20 = vsel %vm640_vm5, %v633_v17, %v546_v18 }
  0xbc   :  { %928 = vmatmul.mubr.bf16.gmra.mrb[32].mxu0 %v666_v20  ;;  %v296_v21 = vpop.permute.xlu0 %295  ;;  %v380_v23 = vpop.permute.xlu1 %379 }
  0xbd   :  { %v583_v22 = vsel %vm553_vm1, %v3137_v19, %v296_v21 }
  0xbe   :  { %v610_v24 = vsel %vm590_vm2, %v583_v22, %v380_v23 }
  0xc0   :  { %v464_v25 = vpop.permute.xlu0 %463  ;;  %v548_v27 = vpop.permute.xlu1 %547 }
  0xc1   :  { %v635_v26 = vsel %vm615_vm4, %v610_v24, %v464_v25  ;;  %2817 = vmatprep.mubr.msk.bf16.mxu0 %vm783_vm3, %v548_v27 }
  0xc2   :  { %v669_v29 = vsel %vm640_vm5, %v635_v26, %v548_v27 }
  0xc4   :  { %938 = vmatmul.mubr.bf16.gmra.mrb[36].mxu0 %v669_v29  ;;  %v298_v30 = vpop.permute.xlu0 %297  ;;  %v382_v32 = vpop.permute.xlu1 %381 }
  0xc5   :  { %v586_v31 = vsel %vm553_vm1, %v3138_v28, %v298_v30 }
  0xc6   :  { %v612_v33 = vsel %vm590_vm2, %v586_v31, %v382_v32 }
  0xc8   :  { %v466_v34 = vpop.permute.xlu0 %465  ;;  %v550_v36 = vpop.permute.xlu1 %549 }
  0xc9   :  { %v637_v35 = vsel %vm615_vm4, %v612_v33, %v466_v34  ;;  %2818 = vmatprep.mubr.msk.bf16.mxu0 %vm783_vm3, %v550_v36 }
  0xca   :  { %v672_v38 = vsel %vm640_vm5, %v637_v35, %v550_v36 }
  0xcc   :  { %948 = vmatmul.mubr.bf16.gmra.mrb[40].mxu0 %v672_v38  ;;  %v300_v39 = vpop.permute.xlu0 %299  ;;  %v384_v41 = vpop.permute.xlu1 %383 }
  0xcd   :  { %v589_v40 = vsel %vm553_vm1, %v3139_v37, %v300_v39  ;;  %vm2459_vm1 = vcmask 523264  }
  0xce   :  { %v614_v42 = vsel %vm590_vm2, %v589_v40, %v384_v41  ;;  %vm2583_vm2 = vcmask 1040384  }
  0xd0   :  { %v468_v43 = vpop.permute.xlu0 %467  ;;  %v552_v45 = vpop.permute.xlu1 %551 }
  0xd1   :  { %v639_v44 = vsel %vm615_vm4, %v614_v42, %v468_v43  ;;  %2819 = vmatprep.mubr.msk.bf16.mxu0 %vm783_vm3, %v552_v45  ;;  %vm2579_vm3 = vcmask 408576   ;;  %vm2627_vm4 = vcmask 80896  }
  0xd2   :  { %v675_v46 = vsel %vm640_vm5, %v639_v44, %v552_v45 }
  0xd4   :  { %958 = vmatmul.mubr.bf16.gmra.mrb[44].mxu0 %v675_v46 }
 0x14f   :  { %v849_v47 = vpop.f32.mrb[0].mxu0 }
 0x150   :  { %v851_v48 = vpop.f32.mrb[1].mxu0 }
 0x151   :  { %969 = vst.msk [vmem:[#allocation2 + $0x8] sm:$0xff] %vm640_vm5, %v851_v48  ;;  %v853_v49 = vpop.f32.mrb[2].mxu0 }
 0x152   :  { %v855_v50 = vpop.f32.mrb[3].mxu0  ;;  %v3704_v51 = vmax.f32 %v849_v47, %v853_v49 }
 0x153   :  { %971 = vst.msk [vmem:[#allocation2 + $0x18] sm:$0xff] %vm640_vm5, %v855_v50 }
 0x157   :  { %v859_v52 = vpop.f32.mrb[4].mxu0 }
 0x158   :  { %v861_v53 = vpop.f32.mrb[5].mxu0 }
 0x159   :  { %973 = vst.msk [vmem:[#allocation2 + $0x28] sm:$0xff] %vm640_vm5, %v861_v53  ;;  %v863_v54 = vpop.f32.mrb[6].mxu0 }
 0x15a   :  { %v865_v55 = vpop.f32.mrb[7].mxu0  ;;  %v3708_v56 = vmax.f32 %v859_v52, %v863_v54 }
 0x15b   :  { %975 = vst.msk [vmem:[#allocation2 + $0x38] sm:$0xff] %vm640_vm5, %v865_v55 }
 0x15c   :  { %1052 = vrot.lane.b32.xlu0 %v3708_v56, %s3301_s0 }
 0x15f   :  { %v869_v57 = vpop.f32.mrb[8].mxu0 }
 0x160   :  { %v871_v58 = vpop.f32.mrb[9].mxu0  ;;  %v1045_v61 = vld [vmem:[#allocation2 + $0x28] sm:$0xff] }
 0x161   :  { %977 = vst.msk [vmem:[#allocation2 + $0x48] sm:$0xff] %vm640_vm5, %v871_v58  ;;  %v873_v59 = vpop.f32.mrb[10].mxu0 }
 0x162   :  { %v875_v60 = vpop.f32.mrb[11].mxu0  ;;  %v1047_v62 = vld [vmem:[#allocation2 + $0x38] sm:$0xff]  ;;  %v3714_v63 = vmax.f32 %v869_v57, %v873_v59 }
 0x163   :  { %979 = vst.msk [vmem:[#allocation2 + $0x58] sm:$0xff] %vm640_vm5, %v875_v60  ;;  %v1049_v0 = vmax.f32 %v1045_v61, %v1047_v62 }
 0x164   :  { %1072 = vrot.lane.b32.xlu0 %v3714_v63, %s3301_s0 }
 0x165   :  { %1054 = vrot.lane.b32.xlu1 %v1049_v0, %s3301_s0 }
 0x167   :  { %v879_v1 = vpop.f32.mrb[12].mxu0 }
 0x168   :  { %v881_v2 = vpop.f32.mrb[13].mxu0  ;;  %v1065_v5 = vld [vmem:[#allocation2 + $0x48] sm:$0xff] }
 0x169   :  { %981 = vst.msk [vmem:[#allocation2 + $0x68] sm:$0xff] %vm640_vm5, %v881_v2  ;;  %v883_v3 = vpop.f32.mrb[14].mxu0 }
 0x16a   :  { %v885_v4 = vpop.f32.mrb[15].mxu0  ;;  %v1067_v6 = vld [vmem:[#allocation2 + $0x58] sm:$0xff]  ;;  %v3721_v7 = vmax.f32 %v879_v1, %v883_v3 }
 0x16b   :  { %983 = vst.msk [vmem:[#allocation2 + $0x78] sm:$0xff] %vm640_vm5, %v885_v4  ;;  %v1069_v8 = vmax.f32 %v1065_v5, %v1067_v6  ;;  %v1026_v4 = vld [vmem:[#allocation2 + $0x18] sm:$0xff]  ;;  %v1024_v5 = vld [vmem:[#allocation2 + $0x8] sm:$0xff] }
 0x16c   :  { %1092 = vrot.lane.b32.xlu0 %v3721_v7, %s3301_s0  ;;  %v1028_v6 = vmax.f32 %v1024_v5, %v1026_v4 }
 0x16d   :  { %1074 = vrot.lane.b32.xlu1 %v1069_v8, %s3301_s0 }
 0x16f   :  { %v889_v9 = vpop.f32.mrb[16].mxu0 }
 0x170   :  { %v891_v10 = vpop.f32.mrb[17].mxu0  ;;  %v1085_v13 = vld [vmem:[#allocation2 + $0x68] sm:$0xff] }
 0x171   :  { %985 = vst.msk [vmem:[#allocation2 + $0x88] sm:$0xff] %vm640_vm5, %v891_v10  ;;  %v893_v11 = vpop.f32.mrb[18].mxu0 }
 0x172   :  { %v895_v12 = vpop.f32.mrb[19].mxu0  ;;  %v1087_v14 = vld [vmem:[#allocation2 + $0x78] sm:$0xff]  ;;  %v3728_v15 = vmax.f32 %v889_v9, %v893_v11 }
 0x173   :  { %987 = vst.msk [vmem:[#allocation2 + $0x98] sm:$0xff] %vm640_vm5, %v895_v12  ;;  %v1089_v16 = vmax.f32 %v1085_v13, %v1087_v14  ;;  %v3150_v13 = vld [vmem:[%s4242_s3 + $0x4] ss:$8 sps:$4 sm:$0xff]   ;;  %v3154_v14 = vld [vmem:[%s4242_s3] ss:$8 sps:$4 sm:$0xff]  }
 0x174   :  { %1112 = vrot.lane.b32.xlu0 %v3728_v15, %s3301_s0  ;;  %1957 = vmatprep.subr.bf16.mxu1 %v3150_v13  ;;  %v3204_v13 = vld [vmem:[%s4242_s3 + $0x104] ss:$8 sps:$4 sm:$0xff]  }
 0x175   :  { %1094 = vrot.lane.b32.xlu1 %v1089_v16, %s3301_s0  ;;  %v3155_v16 = vld [vmem:[%s4242_s3 + $0x14] ss:$8 sps:$4 sm:$0xff]   ;;  %1958 = vmatpush1.bf16.msra.mxu1 %v3154_v14 }
 0x176   :  { %1959 = vmatprep.subr.bf16.mxu1 %v3155_v16 }
 0x177   :  { %v899_v17 = vpop.f32.mrb[20].mxu0 }
 0x178   :  { %v901_v18 = vpop.f32.mrb[21].mxu0  ;;  %v1105_v19 = vld [vmem:[#allocation2 + $0x88] sm:$0xff] }
 0x179   :  { %989 = vst.msk [vmem:[#allocation2 + $0xa8] sm:$0xff] %vm640_vm5, %v901_v18  ;;  %v903_v20 = vpop.f32.mrb[22].mxu0  ;;  %v3159_v18 = vld [vmem:[%s4242_s3 + $0x24] ss:$8 sps:$4 sm:$0xff]  }
 0x17a   :  { %v905_v21 = vpop.f32.mrb[23].mxu0  ;;  %v1107_v22 = vld [vmem:[#allocation2 + $0x98] sm:$0xff]  ;;  %v3735_v23 = vmax.f32 %v899_v17, %v903_v20  ;;  %v3158_v17 = vld [vmem:[%s4242_s3 + $0x10] ss:$8 sps:$4 sm:$0xff]   ;;  %v3163_v20 = vld [vmem:[%s4242_s3 + $0x34] ss:$8 sps:$4 sm:$0xff]  }
 0x17b   :  { %991 = vst.msk [vmem:[#allocation2 + $0xb8] sm:$0xff] %vm640_vm5, %v905_v21  ;;  %v1109_v24 = vmax.f32 %v1105_v19, %v1107_v22  ;;  %1960 = vmatpush1.bf16.msra.mxu1 %v3158_v17  ;;  %v3162_v19 = vld [vmem:[%s4242_s3 + $0x20] ss:$8 sps:$4 sm:$0xff]   ;;  %v3165_v21 = vld [vmem:[%s4242_s3 + $0x30] ss:$8 sps:$4 sm:$0xff]  }
 0x17c   :  { %1132 = vrot.lane.b32.xlu0 %v3735_v23, %s3301_s0  ;;  %1961 = vmatprep.subr.bf16.mxu1 %v3159_v18  ;;  %v3166_v22 = vld [vmem:[%s4242_s3 + $0x44] ss:$8 sps:$4 sm:$0xff]  }
 0x17d   :  { %1114 = vrot.lane.b32.xlu1 %v1109_v24, %s3301_s0  ;;  %v3168_v24 = vld [vmem:[%s4242_s3 + $0x40] ss:$8 sps:$4 sm:$0xff]  }
 0x17f   :  { %v909_v25 = vpop.f32.mrb[24].mxu0  ;;  %1962 = vmatpush1.bf16.msra.mxu1 %v3162_v19 }
 0x180   :  { %v911_v26 = vpop.f32.mrb[25].mxu0  ;;  %v1125_v27 = vld [vmem:[#allocation2 + $0xa8] sm:$0xff]  ;;  %1963 = vmatprep.subr.bf16.mxu1 %v3163_v20 }
 0x181   :  { %993 = vst.msk [vmem:[#allocation2 + $0xc8] sm:$0xff] %vm640_vm5, %v911_v26  ;;  %v913_v28 = vpop.f32.mrb[26].mxu0  ;;  %v3171_v26 = vld [vmem:[%s4242_s3 + $0x50] ss:$8 sps:$4 sm:$0xff]  }
 0x182   :  { %v915_v29 = vpop.f32.mrb[27].mxu0  ;;  %v1127_v30 = vld [vmem:[#allocation2 + $0xb8] sm:$0xff]  ;;  %v3742_v31 = vmax.f32 %v909_v25, %v913_v28  ;;  %v3169_v25 = vld [vmem:[%s4242_s3 + $0x54] ss:$8 sps:$4 sm:$0xff]  }
 0x183   :  { %995 = vst.msk [vmem:[#allocation2 + $0xd8] sm:$0xff] %vm640_vm5, %v915_v29  ;;  %v1129_v32 = vmax.f32 %v1125_v27, %v1127_v30  ;;  %1964 = vmatpush1.bf16.msra.mxu1 %v3165_v21  ;;  %v3172_v27 = vld [vmem:[%s4242_s3 + $0x64] ss:$8 sps:$4 sm:$0xff]   ;;  %v3174_v28 = vld [vmem:[%s4242_s3 + $0x60] ss:$8 sps:$4 sm:$0xff]  }
 0x184   :  { %1152 = vrot.lane.b32.xlu0 %v3742_v31, %s3301_s0  ;;  %1965 = vmatprep.subr.bf16.mxu1 %v3166_v22  ;;  %v3175_v29 = vld [vmem:[%s4242_s3 + $0x74] ss:$8 sps:$4 sm:$0xff]   ;;  %v3177_v30 = vld [vmem:[%s4242_s3 + $0x70] ss:$8 sps:$4 sm:$0xff]  }
 0x185   :  { %1134 = vrot.lane.b32.xlu1 %v1129_v32, %s3301_s0  ;;  %v3178_v32 = vld [vmem:[%s4242_s3 + $0x84] ss:$8 sps:$4 sm:$0xff]  }
 0x187   :  { %v919_v33 = vpop.f32.mrb[28].mxu0  ;;  %1966 = vmatpush1.bf16.msra.mxu1 %v3168_v24 }
 0x188   :  { %v921_v34 = vpop.f32.mrb[29].mxu0  ;;  %v1145_v35 = vld [vmem:[#allocation2 + $0xc8] sm:$0xff]  ;;  %1967 = vmatprep.subr.bf16.mxu1 %v3169_v25 }
 0x189   :  { %997 = vst.msk [vmem:[#allocation2 + $0xe8] sm:$0xff] %vm640_vm5, %v921_v34  ;;  %v923_v36 = vpop.f32.mrb[30].mxu0  ;;  %v3181_v34 = vld [vmem:[%s4242_s3 + $0x94] ss:$8 sps:$4 sm:$0xff]  }
 0x18a   :  { %v925_v37 = vpop.f32.mrb[31].mxu0  ;;  %v1147_v38 = vld [vmem:[#allocation2 + $0xd8] sm:$0xff]  ;;  %v3749_v39 = vmax.f32 %v919_v33, %v923_v36 }
 0x18b   :  { %999 = vst.msk [vmem:[#allocation2 + $0xf8] sm:$0xff] %vm640_vm5, %v925_v37  ;;  %v1149_v40 = vmax.f32 %v1145_v35, %v1147_v38  ;;  %1968 = vmatpush1.bf16.msra.mxu1 %v3171_v26  ;;  %v3180_v33 = vld [vmem:[%s4242_s3 + $0x80] ss:$8 sps:$4 sm:$0xff]   ;;  %v3183_v35 = vld [vmem:[%s4242_s3 + $0x90] ss:$8 sps:$4 sm:$0xff]  }
 0x18c   :  { %1172 = vrot.lane.b32.xlu0 %v3749_v39, %s3301_s0  ;;  %1969 = vmatprep.subr.bf16.mxu1 %v3172_v27  ;;  %v3184_v36 = vld [vmem:[%s4242_s3 + $0xa4] ss:$8 sps:$4 sm:$0xff]   ;;  %v3186_v37 = vld [vmem:[%s4242_s3 + $0xa0] ss:$8 sps:$4 sm:$0xff]   ;;  %v3187_v38 = vld [vmem:[%s4242_s3 + $0xb4] ss:$8 sps:$4 sm:$0xff]  }
 0x18d   :  { %1154 = vrot.lane.b32.xlu1 %v1149_v40, %s3301_s0 }
 0x18f   :  { %v929_v41 = vpop.f32.mrb[32].mxu0  ;;  %1970 = vmatpush1.bf16.msra.mxu1 %v3174_v28 }
 0x190   :  { %v931_v42 = vpop.f32.mrb[33].mxu0  ;;  %v1165_v43 = vld [vmem:[#allocation2 + $0xe8] sm:$0xff]  ;;  %1971 = vmatprep.subr.bf16.mxu1 %v3175_v29 }
 0x191   :  { %1001 = vst.msk [vmem:[#allocation2 + $0x108] sm:$0xff] %vm640_vm5, %v931_v42  ;;  %v933_v44 = vpop.f32.mrb[34].mxu0  ;;  %v3853_v42 = vld [vmem:[%s4243_s2] ss:$0 sm:$0xff] }
 0x192   :  { %v935_v45 = vpop.f32.mrb[35].mxu0  ;;  %v1167_v46 = vld [vmem:[#allocation2 + $0xf8] sm:$0xff]  ;;  %v3756_v47 = vmax.f32 %v929_v41, %v933_v44  ;;  %v3189_v44 = vld [vmem:[%s4242_s3 + $0xb0] ss:$8 sps:$4 sm:$0xff]  }
 0x193   :  { %1003 = vst.msk [vmem:[#allocation2 + $0x118] sm:$0xff] %vm640_vm5, %v935_v45  ;;  %v1169_v48 = vmax.f32 %v1165_v43, %v1167_v46  ;;  %1972 = vmatpush1.bf16.msra.mxu1 %v3177_v30  ;;  %v3190_v46 = vld [vmem:[%s4242_s3 + $0xc4] ss:$8 sps:$4 sm:$0xff]  }
 0x194   :  { %1192 = vrot.lane.b32.xlu0 %v3756_v47, %s3301_s0  ;;  %1973 = vmatprep.subr.bf16.mxu1 %v3178_v32 }
 0x195   :  { %1174 = vrot.lane.b32.xlu1 %v1169_v48, %s3301_s0 }
 0x197   :  { %v939_v49 = vpop.f32.mrb[36].mxu0  ;;  %1974 = vmatpush1.bf16.msra.mxu1 %v3180_v33 }
 0x198   :  { %v941_v50 = vpop.f32.mrb[37].mxu0  ;;  %v1185_v52 = vld [vmem:[#allocation2 + $0x108] sm:$0xff]  ;;  %1975 = vmatprep.subr.bf16.mxu1 %v3181_v34 }
 0x199   :  { %1005 = vst.msk [vmem:[#allocation2 + $0x128] sm:$0xff] %vm640_vm5, %v941_v50  ;;  %v943_v53 = vpop.f32.mrb[38].mxu0 }
 0x19a   :  { %v945_v54 = vpop.f32.mrb[39].mxu0  ;;  %v1187_v55 = vld [vmem:[#allocation2 + $0x118] sm:$0xff]  ;;  %v3763_v57 = vmax.f32 %v939_v49, %v943_v53 }
 0x19b   :  { %1007 = vst.msk [vmem:[#allocation2 + $0x138] sm:$0xff] %vm640_vm5, %v945_v54  ;;  %v1189_v58 = vmax.f32 %v1185_v52, %v1187_v55  ;;  %1976 = vmatpush1.bf16.msra.mxu1 %v3183_v35  ;;  %v3192_v49 = vld [vmem:[%s4242_s3 + $0xc0] ss:$8 sps:$4 sm:$0xff]   ;;  %v3193_v52 = vld [vmem:[%s4242_s3 + $0xd4] ss:$8 sps:$4 sm:$0xff]  }
 0x19c   :  { %1212 = vrot.lane.b32.xlu0 %v3763_v57, %s3301_s0  ;;  %1977 = vmatprep.subr.bf16.mxu1 %v3184_v36 }
 0x19d   :  { %1194 = vrot.lane.b32.xlu1 %v1189_v58, %s3301_s0  ;;  %v3195_v58 = vld [vmem:[%s4242_s3 + $0xd0] ss:$8 sps:$4 sm:$0xff]  }
 0x19f   :  { %v949_v59 = vpop.f32.mrb[40].mxu0  ;;  %1978 = vmatpush1.bf16.msra.mxu1 %v3186_v37 }
 0x1a0   :  { %v1205_v60 = vld [vmem:[#allocation2 + $0x128] sm:$0xff]  ;;  %1031 = vrot.lane.b32.xlu0 %v3704_v51, %s3301_s0  ;;  %v951_v61 = vpop.f32.mrb[41].mxu0  ;;  %1979 = vmatprep.subr.bf16.mxu1 %v3187_v38 }
 0x1a1   :  { %1009 = vst.msk [vmem:[#allocation2 + $0x148] sm:$0xff] %vm640_vm5, %v951_v61  ;;  %v953_v62 = vpop.f32.mrb[42].mxu0  ;;  %v3196_v61 = vld [vmem:[%s4242_s3 + $0xe4] ss:$8 sps:$4 sm:$0xff]  }
 0x1a2   :  { %v1207_v0 = vld [vmem:[#allocation2 + $0x138] sm:$0xff]  ;;  %v955_v1 = vpop.f32.mrb[43].mxu0  ;;  %v3772_v2 = vmax.f32 %v949_v59, %v953_v62 }
 0x1a3   :  { %v1209_v3 = vmax.f32 %v1205_v60, %v1207_v0  ;;  %1011 = vst.msk [vmem:[#allocation2 + $0x158] sm:$0xff] %vm640_vm5, %v955_v1  ;;  %1980 = vmatpush1.bf16.msra.mxu1 %v3189_v44  ;;  %v3198_v62 = vld [vmem:[%s4242_s3 + $0xe0] ss:$8 sps:$4 sm:$0xff]  }
 0x1a4   :  { %1981 = vmatprep.subr.bf16.mxu1 %v3190_v46 }
 0x1a5   :  { %1214 = vrot.lane.b32.xlu1 %v1209_v3, %s3301_s0 }
 0x1a7   :  { %v959_v8 = vpop.f32.mrb[44].mxu0  ;;  %1982 = vmatpush1.bf16.msra.mxu1 %v3192_v49 }
 0x1a8   :  { %v961_v9 = vpop.f32.mrb[45].mxu0  ;;  %1983 = vmatprep.subr.bf16.mxu1 %v3193_v52  ;;  %v1225_v25 = vld [vmem:[#allocation2 + $0x148] sm:$0xff] }
 0x1a9   :  { %1033 = vrot.lane.b32.xlu1 %v1028_v6, %s3301_s0  ;;  %1013 = vst.msk [vmem:[#allocation2 + $0x168] sm:$0xff] %vm640_vm5, %v961_v9  ;;  %v963_v10 = vpop.f32.mrb[46].mxu0  ;;  %v3201_v6 = vld [vmem:[%s4242_s3 + $0xf0] ss:$8 sps:$4 sm:$0xff]  }
 0x1aa   :  { %v965_v11 = vpop.f32.mrb[47].mxu0  ;;  %v3778_v12 = vmax.f32 %v959_v8, %v963_v10  ;;  %v1227_v28 = vld [vmem:[#allocation2 + $0x158] sm:$0xff] }
 0x1ab   :  { %1015 = vst.msk [vmem:[#allocation2 + $0x178] sm:$0xff] %vm640_vm5, %v965_v11  ;;  %1984 = vmatpush1.bf16.msra.mxu1 %v3195_v58  ;;  %v1229_v30 = vmax.f32 %v1225_v25, %v1227_v28  ;;  %v3202_v25 = vld [vmem:[%s4242_s3 + $0x100] ss:$8 sps:$4 sm:$0xff]  }
 0x1ac   :  { %1985 = vmatprep.subr.bf16.mxu1 %v3196_v61 }
 0x1af   :  { %1986 = vmatpush1.bf16.msra.mxu1 %v3198_v62 }
 0x1b0   :  { %v1245_v34 = vld [vmem:[#allocation2 + $0x168] sm:$0xff] }
 0x1b2   :  { %v1247_v35 = vld [vmem:[#allocation2 + $0x178] sm:$0xff] }
 0x1ce   :  { %v1053_v40 = vpop.permute.xlu0 %1052 }
 0x1d6   :  { %v1073_v53 = vpop.permute.xlu0 %1072 }
 0x1d7   :  { %v1055_v41 = vpop.permute.xlu1 %1054 }
 0x1d8   :  { %v1056_v43 = vsel %vm1035_vm6, %v1053_v40, %v1055_v41  ;;  %v1249_v40 = vmax.f32 %v1245_v34, %v1247_v35  ;;  %v3211_v34 = vld [vmem:[%s4242_s3 + $0x124] ss:$8 sps:$4 sm:$0xff]  }
 0x1d9   :  { %v1058_v45 = vmax.f32 %v3708_v56, %v1056_v43 }
 0x1db   :  { %v1059_v48 = vadd.f32 %v3853_v42, %v1058_v45 }
 0x1dd   :  { %v1060_v50 = vmax.f32 %v1059_v48, 0.0 }
 0x1de   :  { %v1093_v3 = vpop.permute.xlu0 %1092 }
 0x1df   :  { %v1061_v56 = vpack.c.bf16 %v1060_v50, %v1060_v50  ;;  %v1075_v54 = vpop.permute.xlu1 %1074 }
 0x1e0   :  { %v1076_v55 = vsel %vm1035_vm6, %v1073_v53, %v1075_v54 }
 0x1e1   :  { %1063 = vst.msk [vmem:[#allocation3 + $0x4] sm:$0xf] %vm1042_vm7, %v1061_v56  ;;  %v1078_v59 = vmax.f32 %v3714_v63, %v1076_v55  ;;  %v3199_v63 = vld [vmem:[%s4242_s3 + $0xf4] ss:$8 sps:$4 sm:$0xff]  }
 0x1e2   :  { %1987 = vmatprep.subr.bf16.mxu1 %v3199_v63 }
 0x1e3   :  { %v1079_v60 = vadd.f32 %v3853_v42, %v1078_v59  ;;  %1988 = vmatpush1.bf16.msra.mxu1 %v3201_v6 }
 0x1e4   :  { %2030 = vmatprep.subr.bf16.mxu1 %v3204_v13 }
 0x1e5   :  { %v1080_v0 = vmax.f32 %v1079_v60, 0.0 }
 0x1e6   :  { %v1113_v11 = vpop.permute.xlu0 %1112 }
 0x1e7   :  { %v1081_v1 = vpack.c.bf16 %v1080_v0, %v1080_v0  ;;  %v1095_v4 = vpop.permute.xlu1 %1094 }
 0x1e8   :  { %v1096_v5 = vsel %vm1035_vm6, %v1093_v3, %v1095_v4 }
 0x1e9   :  { %1083 = vst.msk [vmem:[#allocation3 + $0x8] sm:$0xf] %vm1042_vm7, %v1081_v1  ;;  %v1098_v8 = vmax.f32 %v3721_v7, %v1096_v5 }
 0x1eb   :  { %v1099_v9 = vadd.f32 %v3853_v42, %v1098_v8 }
 0x1ed   :  { %v1100_v10 = vmax.f32 %v1099_v9, 0.0 }
 0x1ee   :  { %v1133_v21 = vpop.permute.xlu0 %1132 }
 0x1ef   :  { %v1101_v14 = vpack.c.bf16 %v1100_v10, %v1100_v10  ;;  %v1115_v16 = vpop.permute.xlu1 %1114 }
 0x1f0   :  { %v1116_v17 = vsel %vm1035_vm6, %v1113_v11, %v1115_v16  ;;  %v3140_v18 = vld [vmem:[#allocation3 + $0x4] sm:$0xff]  }
 0x1f1   :  { %1103 = vst.msk [vmem:[#allocation3 + $0xc] sm:$0xf] %vm1042_vm7, %v1101_v14  ;;  %v1118_v7 = vmax.f32 %v3728_v15, %v1116_v17  ;;  %1344 = vrot.lane.b32.xlu0 %v3140_v18, %s3302_s28 }
 0x1f3   :  { %v1119_v19 = vadd.f32 %v3853_v42, %v1118_v7 }
 0x1f5   :  { %v1120_v20 = vmax.f32 %v1119_v19, 0.0  ;;  %1232 = vrot.lane.b32.xlu0 %v3772_v2, %s3301_s0 }
 0x1f6   :  { %v1153_v33 = vpop.permute.xlu0 %1152 }
 0x1f7   :  { %v1121_v22 = vpack.c.bf16 %v1120_v20, %v1120_v20  ;;  %v1135_v24 = vpop.permute.xlu1 %1134 }
 0x1f8   :  { %v1136_v26 = vsel %vm1035_vm6, %v1133_v21, %v1135_v24  ;;  %v3141_v27 = vld [vmem:[#allocation3 + $0x8] sm:$0xff]  }
 0x1f9   :  { %1123 = vst.msk [vmem:[#allocation3 + $0x10] sm:$0xf] %vm1042_vm7, %v1121_v22  ;;  %v1138_v15 = vmax.f32 %v3735_v23, %v1136_v26  ;;  %1372 = vrot.lane.b32.xlu1 %v3141_v27, %s3300_s22  ;;  %1252 = vrot.lane.b32.xlu0 %v3778_v12, %s3301_s0 }
 0x1fb   :  { %v1139_v29 = vadd.f32 %v3853_v42, %v1138_v15  ;;  %v3208_v15 = vld [vmem:[%s4242_s3 + $0x114] ss:$8 sps:$4 sm:$0xff]  }
 0x1fd   :  { %v1140_v32 = vmax.f32 %v1139_v29, 0.0  ;;  %1234 = vrot.lane.b32.xlu1 %v1229_v30, %s3301_s0 }
 0x1fe   :  { %v1173_v45 = vpop.permute.xlu0 %1172 }
 0x1ff   :  { %v1141_v36 = vpack.c.bf16 %v1140_v32, %v1140_v32  ;;  %v1155_v37 = vpop.permute.xlu1 %1154  ;;  %v3206_v32 = vld [vmem:[%s4242_s3 + $0x110] ss:$8 sps:$4 sm:$0xff]  }
 0x200   :  { %v1156_v38 = vsel %vm1035_vm6, %v1153_v33, %v1155_v37  ;;  %v3142_v23 = vld [vmem:[#allocation3 + $0xc] sm:$0xff]  }
 0x201   :  { %1143 = vst.msk [vmem:[#allocation3 + $0x14] sm:$0xf] %vm1042_vm7, %v1141_v36  ;;  %v1158_v41 = vmax.f32 %v3742_v31, %v1156_v38  ;;  %1346 = vrot.lane.b32.xlu0 %v3142_v23, %s3302_s28  ;;  %1254 = vrot.lane.b32.xlu1 %v1249_v40, %s3301_s0  ;;  %v3147_v17 = vld [vmem:[#allocation3 + $0xc] sm:$0xff]   ;;  %s3303_s0 = smov 104   ;;  %v3209_v23 = vld [vmem:[%s4242_s3 + $0x120] ss:$8 sps:$4 sm:$0xff]  }
 0x203   :  { %v1159_v43 = vadd.f32 %v3853_v42, %v1158_v41  ;;  %v3214_v41 = vld [vmem:[%s4242_s3 + $0x134] ss:$8 sps:$4 sm:$0xff]  }
 0x205   :  { %v1160_v44 = vmax.f32 %v1159_v43, 0.0 }
 0x206   :  { %v1193_v54 = vpop.permute.xlu0 %1192 }
 0x207   :  { %v1161_v46 = vpack.c.bf16 %v1160_v44, %v1160_v44  ;;  %v1175_v48 = vpop.permute.xlu1 %1174 }
 0x208   :  { %v1176_v49 = vsel %vm1035_vm6, %v1173_v45, %v1175_v48  ;;  %v3143_v50 = vld [vmem:[#allocation3 + $0x10] sm:$0xff]   ;;  %v3217_v48 = vld [vmem:[%s4242_s3 + $0x144] ss:$8 sps:$4 sm:$0xff]  }
 0x209   :  { %1163 = vst.msk [vmem:[#allocation3 + $0x18] sm:$0xf] %vm1042_vm7, %v1161_v46  ;;  %v1178_v52 = vmax.f32 %v3749_v39, %v1176_v49  ;;  %1374 = vrot.lane.b32.xlu1 %v3143_v50, %s3300_s22  ;;  %v3153_v19 = vld [vmem:[#allocation3 + $0x10] sm:$0xff]  }
 0x20a   :  { %v3212_v46 = vld [vmem:[%s4242_s3 + $0x130] ss:$8 sps:$4 sm:$0xff]  }
 0x20b   :  { %v1179_v31 = vadd.f32 %v3853_v42, %v1178_v52 }
 0x20d   :  { %v1180_v56 = vmax.f32 %v1179_v31, 0.0  ;;  %v3218_v31 = vld [vmem:[#allocation3 + $0x8] sm:$0xff]  }
 0x20e   :  { %v1213_v62 = vpop.permute.xlu0 %1212 }
 0x20f   :  { %v1181_v53 = vpack.c.bf16 %v1180_v56, %v1180_v56  ;;  %v1195_v55 = vpop.permute.xlu1 %1194 }
 0x210   :  { %v1196_v58 = vsel %vm1035_vm6, %v1193_v54, %v1195_v55  ;;  %v3144_v59 = vld [vmem:[#allocation3 + $0x14] sm:$0xff]   ;;  %v3219_v55 = vld [vmem:[%s4242_s3 + $0x150] ss:$8 sps:$4 sm:$0xff]  }
 0x211   :  { %1183 = vst.msk [vmem:[#allocation3 + $0x1c] sm:$0xf] %vm1042_vm7, %v1181_v53  ;;  %v1198_v60 = vmax.f32 %v3756_v47, %v1196_v58  ;;  %1348 = vrot.lane.b32.xlu0 %v3144_v59, %s3302_s28  ;;  %v3148_v18 = vld [vmem:[#allocation3 + $0x14] sm:$0xff]   ;;  %v3225_v58 = vld [vmem:[%s4242_s3 + $0x164] ss:$8 sps:$4 sm:$0xff]  }
 0x212   :  { %v1032_v47 = vpop.permute.xlu0 %1031  ;;  %v3221_v53 = vld [vmem:[%s4242_s3 + $0x154] ss:$8 sps:$4 sm:$0xff]  }
 0x213   :  { %v1199_v61 = vadd.f32 %v3853_v42, %v1198_v60  ;;  %v3223_v60 = vld [vmem:[%s4242_s3 + $0x160] ss:$8 sps:$4 sm:$0xff]  }
 0x215   :  { %v1200_v39 = vmax.f32 %v1199_v61, 0.0 }
 0x217   :  { %v1201_v0 = vpack.c.bf16 %v1200_v39, %v1200_v39  ;;  %v1215_v1 = vpop.permute.xlu1 %1214  ;;  %v3229_v39 = vld [vmem:[%s4242_s3 + $0x174] ss:$8 sps:$4 sm:$0xff]  }
 0x218   :  { %v1216_v3 = vsel %vm1035_vm6, %v1213_v62, %v1215_v1  ;;  %v3145_v4 = vld [vmem:[#allocation3 + $0x18] sm:$0xff]   ;;  %v3227_v62 = vld [vmem:[%s4242_s3 + $0x170] ss:$8 sps:$4 sm:$0xff]  }
 0x219   :  { %1203 = vst.msk [vmem:[#allocation3 + $0x20] sm:$0xf] %vm1042_vm7, %v1201_v0  ;;  %v1218_v5 = vmax.f32 %v3763_v57, %v1216_v3  ;;  %1376 = vrot.lane.b32.xlu1 %v3145_v4, %s3300_s22  ;;  %v3157_v20 = vld [vmem:[#allocation3 + $0x18] sm:$0xff]  }
 0x21a   :  { %v3232_v0 = vld [vmem:[%s4242_s3 + $0x184] ss:$8 sps:$4 sm:$0xff]   ;;  %v3230_v4 = vld [vmem:[%s4242_s3 + $0x180] ss:$8 sps:$4 sm:$0xff]  }
 0x21b   :  { %v1219_v63 = vadd.f32 %v3853_v42, %v1218_v5  ;;  %v1034_v6 = vpop.permute.xlu1 %1033  ;;  %v3233_v5 = vld [vmem:[#allocation3 + $0x10] sm:$0xff]  }
 0x21c   :  { %v1036_v8 = vsel %vm1035_vm6, %v1032_v47, %v1034_v6  ;;  %v3236_v47 = vld [vmem:[%s4242_s3 + $0x194] ss:$8 sps:$4 sm:$0xff]  }
 0x21d   :  { %v1220_v9 = vmax.f32 %v1219_v63, 0.0  ;;  %v1038_v10 = vmax.f32 %v3704_v51, %v1036_v8  ;;  %v3234_v8 = vld [vmem:[%s4242_s3 + $0x190] ss:$8 sps:$4 sm:$0xff]  }
 0x21f   :  { %v1221_v11 = vpack.c.bf16 %v1220_v9, %v1220_v9  ;;  %v1039_v13 = vadd.f32 %v3853_v42, %v1038_v10  ;;  %v3239_v9 = vld [vmem:[%s4242_s3 + $0x1a4] ss:$8 sps:$4 sm:$0xff]   ;;  %v3237_v10 = vld [vmem:[%s4242_s3 + $0x1a0] ss:$8 sps:$4 sm:$0xff]  }
 0x220   :  { %v3146_v14 = vld [vmem:[#allocation3 + $0x1c] sm:$0xff]  }
 0x221   :  { %1223 = vst.msk [vmem:[#allocation3 + $0x24] sm:$0xf] %vm1042_vm7, %v1221_v11  ;;  %v1040_v16 = vmax.f32 %v1039_v13, 0.0  ;;  %1350 = vrot.lane.b32.xlu0 %v3146_v14, %s3302_s28  ;;  %v3152_v51 = vld [vmem:[#allocation3 + $0x1c] sm:$0xff]   ;;  %v3242_v11 = vld [vmem:[%s4242_s3 + $0x1b4] ss:$8 sps:$4 sm:$0xff]  }
 0x222   :  { %v3240_v13 = vld [vmem:[%s4242_s3 + $0x1b0] ss:$8 sps:$4 sm:$0xff]   ;;  %v3245_v14 = vld [vmem:[%s4242_s3 + $0x1c4] ss:$8 sps:$4 sm:$0xff]  }
 0x223   :  { %v1041_v57 = vpack.c.bf16 %v1040_v16, %v1040_v16 }
 0x225   :  { %1043 = vst.msk [vmem:[#allocation3] sm:$0xf] %vm1042_vm7, %v1041_v57  ;;  %1400 = vrot.lane.b32.xlu0 %v3147_v17, %s3303_s0  ;;  %v3243_v17 = vld [vmem:[%s4242_s3 + $0x1c0] ss:$8 sps:$4 sm:$0xff]  }
 0x228   :  { %v3149_v7 = vld [vmem:[#allocation3 + $0x20] sm:$0xff]  }
 0x229   :  { %1402 = vrot.lane.b32.xlu0 %v3148_v18, %s3303_s0  ;;  %1378 = vrot.lane.b32.xlu1 %v3149_v7, %s3300_s22  ;;  %v3161_v21 = vld [vmem:[#allocation3 + $0x20] sm:$0xff]   ;;  %v3246_v18 = vld [vmem:[#allocation3 + $0x18] sm:$0xff]  }
 0x22c   :  { %v3205_v26 = vld [vmem:[#allocation3] sm:$0xff]  }
 0x22d   :  { %1404 = vrot.lane.b32.xlu0 %v3152_v51, %s3303_s0  ;;  %1428 = vrot.lane.b32.xlu1 %v3153_v19, %s3304_s29  ;;  %v3249_v51 = vld [vmem:[%s4242_s3 + $0x1d4] ss:$8 sps:$4 sm:$0xff]  }
 0x231   :  { %1430 = vrot.lane.b32.xlu1 %v3157_v20, %s3304_s29 }
 0x235   :  { %1432 = vrot.lane.b32.xlu1 %v3161_v21, %s3304_s29 }
 0x263   :  { %v1345_v22 = vpop.permute.xlu0 %1344 }
 0x264   :  { %v1439_v29 = vsel %vm1436_vm8, %v3205_v26, %v1345_v22  ;;  %v3252_v26 = vld [vmem:[%s4242_s3 + $0x1e4] ss:$8 sps:$4 sm:$0xff]  }
 0x267   :  { %v1233_v28 = vpop.permute.xlu0 %1232 }
 0x26b   :  { %v3945_v24 = vpop.permute.xlu1 %1372  ;;  %v1253_v36 = vpop.permute.xlu0 %1252 }
 0x26c   :  { %v1454_v27 = vsel %vm640_vm5, %v1345_v22, %v3945_v24  ;;  %v3247_v22 = vld [vmem:[%s4242_s3 + $0x1d0] ss:$8 sps:$4 sm:$0xff]  }
 0x26d   :  { %1989 = vmatprep.mubr.bf16.mxu1 %v1454_v27  ;;  %v3250_v27 = vld [vmem:[%s4242_s3 + $0x1e0] ss:$8 sps:$4 sm:$0xff]  }
 0x26e   :  { %1990 = vmatmul.mubr.bf16.vlgmr.msra.gmra.mrb[0].mxu1 %v1439_v29  ;;  %v3258_v29 = vld [vmem:[%s4242_s3 + $0x204] ss:$8 sps:$4 sm:$0xff]  }
 0x26f   :  { %2031 = vmatpush1.bf16.msra.mxu1 %v3202_v25  ;;  %v1235_v30 = vpop.permute.xlu1 %1234 }
 0x270   :  { %v1236_v33 = vsel %vm1035_vm6, %v1233_v28, %v1235_v30  ;;  %2032 = vmatprep.subr.bf16.mxu1 %v3208_v15  ;;  %v3255_v15 = vld [vmem:[%s4242_s3 + $0x1f4] ss:$8 sps:$4 sm:$0xff]   ;;  %v3253_v28 = vld [vmem:[%s4242_s3 + $0x1f0] ss:$8 sps:$4 sm:$0xff]  }
 0x271   :  { %v1238_v35 = vmax.f32 %v3772_v2, %v1236_v33  ;;  %v3261_v33 = vld [vmem:[%s4242_s3 + $0x214] ss:$8 sps:$4 sm:$0xff]  }
 0x273   :  { %v1239_v37 = vadd.f32 %v3853_v42, %v1238_v35  ;;  %2033 = vmatpush1.bf16.msra.mxu1 %v3206_v32  ;;  %v1255_v38 = vpop.permute.xlu1 %1254  ;;  %v1347_v50 = vpop.permute.xlu0 %1346  ;;  %v3256_v32 = vld [vmem:[%s4242_s3 + $0x200] ss:$8 sps:$4 sm:$0xff]  }
 0x274   :  { %v1256_v40 = vsel %vm1035_vm6, %v1253_v36, %v1255_v38  ;;  %2034 = vmatprep.subr.bf16.mxu1 %v3211_v34  ;;  %v1443_v54 = vsel %vm1436_vm8, %v3218_v31, %v1347_v50  ;;  %v3264_v38 = vld [vmem:[%s4242_s3 + $0x224] ss:$8 sps:$4 sm:$0xff]  }
 0x275   :  { %v1240_v43 = vmax.f32 %v1239_v37, 0.0  ;;  %v1258_v44 = vmax.f32 %v3778_v12, %v1256_v40  ;;  %v3259_v37 = vld [vmem:[%s4242_s3 + $0x210] ss:$8 sps:$4 sm:$0xff]   ;;  %v3267_v40 = vld [vmem:[%s4242_s3 + $0x234] ss:$8 sps:$4 sm:$0xff]  }
 0x277   :  { %v1241_v2 = vpack.c.bf16 %v1240_v43, %v1240_v43  ;;  %v1259_v45 = vadd.f32 %v3853_v42, %v1258_v44  ;;  %2035 = vmatpush1.bf16.msra.mxu1 %v3209_v23  ;;  %v3215_v42 = vld [vmem:[%s4242_s3 + $0x140] ss:$8 sps:$4 sm:$0xff]  }
 0x278   :  { %2036 = vmatprep.subr.bf16.mxu1 %v3214_v41 }
 0x279   :  { %1243 = vst.msk [vmem:[#allocation3 + $0x28] sm:$0xf] %vm1042_vm7, %v1241_v2  ;;  %v1260_v49 = vmax.f32 %v1259_v45, 0.0  ;;  %v3265_v2 = vld [vmem:[%s4242_s3 + $0x230] ss:$8 sps:$4 sm:$0xff]  }
 0x27a   :  { %v3270_v45 = vld [vmem:[%s4242_s3 + $0x244] ss:$8 sps:$4 sm:$0xff]  }
 0x27b   :  { %v1261_v52 = vpack.c.bf16 %v1260_v49, %v1260_v49  ;;  %2037 = vmatpush1.bf16.msra.mxu1 %v3212_v46  ;;  %v3981_v12 = vpop.permute.xlu1 %1374  ;;  %v1565_v46 = vld [vmem:[%s4242_s3 + $0x250] sm:$0xff] }
 0x27c   :  { %v1457_v56 = vsel %vm640_vm5, %v1347_v50, %v3981_v12  ;;  %2038 = vmatprep.subr.bf16.mxu1 %v3217_v48  ;;  %v3268_v48 = vld [vmem:[%s4242_s3 + $0x240] ss:$8 sps:$4 sm:$0xff]   ;;  %v2916_v49 = vcombine.high %v1565_v46, %v1565_v46  ;;  %v2915_v50 = vcombine.low %v1565_v46, %v1565_v46 }
 0x27d   :  { %1263 = vst.msk [vmem:[#allocation3 + $0x2c] sm:$0xf] %vm1042_vm7, %v1261_v52  ;;  %1999 = vmatprep.mubr.bf16.mxu1 %v1457_v56 }
 0x27e   :  { %2000 = vmatmul.mubr.bf16.gmra.mrb[4].mxu1 %v1443_v54  ;;  %v3305_v54 = vmov 0  }
 0x27f   :  { %2039 = vmatpush1.bf16.msra.mxu1 %v3215_v42 }
 0x280   :  { %2040 = vmatprep.subr.bf16.mxu1 %v3221_v53  ;;  %v3222_v59 = vld [vmem:[#allocation3 + $0x24] sm:$0xff]  }
 0x281   :  { %1406 = vrot.lane.b32.xlu0 %v3222_v59, %s3303_s0 }
 0x283   :  { %2041 = vmatpush1.bf16.msra.mxu1 %v3219_v55  ;;  %v1349_v1 = vpop.permute.xlu0 %1348 }
 0x284   :  { %2042 = vmatprep.subr.bf16.mxu1 %v3225_v58  ;;  %v3226_v61 = vld [vmem:[#allocation3 + $0x28] sm:$0xff]   ;;  %v1447_v6 = vsel %vm1436_vm8, %v3233_v5, %v1349_v1 }
 0x285   :  { %1434 = vrot.lane.b32.xlu1 %v3226_v61, %s3304_s29 }
 0x287   :  { %2043 = vmatpush1.bf16.msra.mxu1 %v3223_v60 }
 0x288   :  { %2044 = vmatprep.subr.bf16.mxu1 %v3229_v39 }
 0x28b   :  { %2045 = vmatpush1.bf16.msra.mxu1 %v3227_v62  ;;  %v4013_v3 = vpop.permute.xlu1 %1376 }
 0x28c   :  { %v1460_v63 = vsel %vm640_vm5, %v1349_v1, %v4013_v3  ;;  %2046 = vmatprep.subr.bf16.mxu1 %v3232_v0 }
 0x28d   :  { %2009 = vmatprep.mubr.bf16.mxu1 %v1460_v63 }
 0x28e   :  { %2010 = vmatmul.mubr.bf16.gmra.mrb[8].mxu1 %v1447_v6 }
 0x28f   :  { %2047 = vmatpush1.bf16.msra.mxu1 %v3230_v4 }
 0x290   :  { %2048 = vmatprep.subr.bf16.mxu1 %v3236_v47 }
 0x293   :  { %2049 = vmatpush1.bf16.msra.mxu1 %v3234_v8  ;;  %v1351_v16 = vpop.permute.xlu0 %1350 }
 0x294   :  { %2050 = vmatprep.subr.bf16.mxu1 %v3239_v9  ;;  %v1451_v19 = vsel %vm1436_vm8, %v3246_v18, %v1351_v16 }
 0x297   :  { %2051 = vmatpush1.bf16.msra.mxu1 %v3237_v10  ;;  %v1401_v20 = vpop.permute.xlu0 %1400 }
 0x298   :  { %2052 = vmatprep.subr.bf16.mxu1 %v3242_v11  ;;  %v1467_v34 = vsel %vm1465_vm10, %v3945_v24, %v1401_v20  ;;  %v3262_v24 = vld [vmem:[%s4242_s3 + $0x220] ss:$8 sps:$4 sm:$0xff]   ;;  %s3306_s3 = smov 48  }
 0x29b   :  { %2053 = vmatpush1.bf16.msra.mxu1 %v3240_v13  ;;  %v4042_v57 = vpop.permute.xlu1 %1378  ;;  %v1403_v35 = vpop.permute.xlu0 %1402 }
 0x29c   :  { %v1463_v7 = vsel %vm640_vm5, %v1351_v16, %v4042_v57  ;;  %2054 = vmatprep.subr.bf16.mxu1 %v3245_v14  ;;  %v1470_v43 = vsel %vm1465_vm10, %v3981_v12, %v1403_v35  ;;  %v1952_v12 = vsel %vm1950_vm11, %v2915_v50, 0 }
 0x29d   :  { %2019 = vmatprep.mubr.bf16.mxu1 %v1463_v7 }
 0x29e   :  { %2020 = vmatmul.mubr.bf16.gmra.mrb[12].mxu1 %v1451_v19 }
 0x29f   :  { %2055 = vmatpush1.bf16.msra.mxu1 %v3243_v17  ;;  %v4053_v21 = vpop.permute.xlu1 %1428  ;;  %v1405_v41 = vpop.permute.xlu0 %1404 }
 0x2a0   :  { %2056 = vmatprep.subr.bf16.mxu1 %v3249_v51  ;;  %v1480_v25 = vsel %vm1478_vm9, %v1401_v20, %v4053_v21  ;;  %v1473_v52 = vsel %vm1465_vm10, %v4013_v3, %v1405_v41 }
 0x2a1   :  { %2062 = vmatprep.mubr.bf16.mxu1 %v1480_v25  ;;  %v3273_v25 = vld [vmem:[%s4244_s5 + $0x40] sm:$0xff]  }
 0x2a2   :  { %2951 = vmatprep.subr.bf16.mxu0 %v3273_v25 }
 0x2a3   :  { %2057 = vmatpush1.bf16.msra.mxu1 %v3247_v22  ;;  %v1431_v30 = vpop.permute.xlu1 %1430 }
 0x2a4   :  { %2058 = vmatprep.subr.bf16.mxu1 %v3252_v26  ;;  %v1483_v36 = vsel %vm1478_vm9, %v1403_v35, %v1431_v30  ;;  %v3274_v26 = vld [vmem:[%s4244_s5] sm:$0xff]  }
 0x2a5   :  { %2952 = vmatpush3.bf16.msra.mxu0 %v3274_v26  ;;  %v3282_v35 = vld [vmem:[%s4244_s5 + $0x20] sm:$0xff]  }
 0x2a7   :  { %2059 = vmatpush1.bf16.msra.mxu1 %v3250_v27  ;;  %v1433_v23 = vpop.permute.xlu1 %1432  ;;  %v3275_v27 = vld [vmem:[%s4244_s5 + $0x48] sm:$0xff]  }
 0x2a8   :  { %2060 = vmatprep.subr.bf16.mxu1 %v3255_v15  ;;  %v1486_v44 = vsel %vm1478_vm9, %v1405_v41, %v1433_v23  ;;  %2953 = vmatprep.subr.bf16.mxu0 %v3275_v27 }
 0x2ab   :  { %2061 = vmatpush1.bf16.msra.mxu1 %v3253_v28  ;;  %v3276_v28 = vld [vmem:[%s4244_s5 + $0x8] sm:$0xff]  }
 0x2ac   :  { %2103 = vmatprep.subr.bf16.mxu1 %v3258_v29  ;;  %v3277_v29 = vld [vmem:[%s4244_s5 + $0x50] sm:$0xff]   ;;  %2954 = vmatpush3.bf16.msra.mxu0 %v3276_v28 }
 0x2ad   :  { %2955 = vmatprep.subr.bf16.mxu0 %v3277_v29 }
 0x2ae   :  { %2063 = vmatmul.mubr.bf16.vlgmr.msra.gmra.mrb[0].mxu1 %v1467_v34  ;;  %v3281_v34 = vld [vmem:[%s4244_s5 + $0x60] sm:$0xff]  }
 0x2af   :  { %2072 = vmatprep.mubr.bf16.mxu1 %v1483_v36  ;;  %2104 = vmatpush1.bf16.msra.mxu1 %v3256_v32  ;;  %v3279_v32 = vld [vmem:[%s4244_s5 + $0x58] sm:$0xff]   ;;  %v3283_v36 = vld [vmem:[%s4244_s5 + $0x68] sm:$0xff]  }
 0x2b0   :  { %2105 = vmatprep.subr.bf16.mxu1 %v3261_v33  ;;  %v3280_v33 = vld [vmem:[%s4244_s5 + $0x18] sm:$0xff]  }
 0x2b3   :  { %2106 = vmatpush1.bf16.msra.mxu1 %v3259_v37  ;;  %v3284_v37 = vld [vmem:[%s4244_s5 + $0x28] sm:$0xff]  }
 0x2b4   :  { %2107 = vmatprep.subr.bf16.mxu1 %v3264_v38  ;;  %v3285_v38 = vld [vmem:[%s4244_s5 + $0x70] sm:$0xff]  }
 0x2b6   :  { %2073 = vmatmul.mubr.bf16.gmra.mrb[4].mxu1 %v1470_v43 }
 0x2b7   :  { %2082 = vmatprep.mubr.bf16.mxu1 %v1486_v44  ;;  %2108 = vmatpush1.bf16.msra.mxu1 %v3262_v24  ;;  %v3287_v24 = vld [vmem:[%s4244_s5 + $0x78] sm:$0xff]   ;;  %v2922_v44 = vld [vmem:[%s4245_s4] ss:$0 sm:$0xff]  ;;  %s3309_s4 = smov 32  }
 0x2b8   :  { %2109 = vmatprep.subr.bf16.mxu1 %v3267_v40  ;;  %v3288_v40 = vld [vmem:[%s4244_s5 + $0x38] sm:$0xff]  }
 0x2bb   :  { %2110 = vmatpush1.bf16.msra.mxu1 %v3265_v2 }
 0x2bc   :  { %2111 = vmatprep.subr.bf16.mxu1 %v3270_v45 }
 0x2be   :  { %2083 = vmatmul.mubr.bf16.gmra.mrb[8].mxu1 %v1473_v52 }
 0x2bf   :  { %2112 = vmatpush1.bf16.msra.mxu1 %v3268_v48 }
 0x2c0   :  { %2917 = vmatprep.subr.msk.bf16.mxu1 %vm1950_vm11, %v2916_v49 }
 0x2c3   :  { %2114 = vmatpush1.bf16.msra.mxu1 %v1952_v12 }
 0x2f3   :  { %v1407_v42 = vpop.permute.xlu0 %1406 }
 0x2f4   :  { %v1476_v53 = vsel %vm1465_vm10, %v4042_v57, %v1407_v42 }
 0x2f7   :  { %v1435_v31 = vpop.permute.xlu1 %1434 }
 0x2f8   :  { %v1489_v56 = vsel %vm1478_vm9, %v1407_v42, %v1435_v31 }
 0x2f9   :  { %2092 = vmatprep.mubr.bf16.mxu1 %v1489_v56 }
 0x2fa   :  { %2093 = vmatmul.mubr.bf16.gmra.mrb[12].mxu1 %v1476_v53 }
 0x2fb   :  { %2135 = vmatprep.mubr.bf16.mxu1 %v3305_v54 }
 0x302   :  { %2918 = vmatmul.mubr.msk.bf16.vlgmr.msra.gmra.mrb[0].mxu1 %vm1941_vm12, %v4053_v21 }
 0x303   :  { %2145 = vmatprep.mubr.bf16.mxu1 %v3305_v54 }
 0x30a   :  { %2919 = vmatmul.mubr.msk.bf16.gmra.mrb[4].mxu1 %vm1941_vm12, %v1431_v30  ;;  %v3278_v30 = vld [vmem:[%s4244_s5 + $0x10] sm:$0xff]  }
 0x30b   :  { %2155 = vmatprep.mubr.bf16.mxu1 %v3305_v54  ;;  %2956 = vmatpush3.bf16.msra.mxu0 %v3278_v30 }
 0x30c   :  { %2957 = vmatprep.subr.bf16.mxu0 %v3279_v32 }
 0x30f   :  { %2958 = vmatpush3.bf16.msra.mxu0 %v3280_v33 }
 0x310   :  { %2959 = vmatprep.subr.bf16.mxu0 %v3281_v34 }
 0x312   :  { %2920 = vmatmul.mubr.msk.bf16.gmra.mrb[8].mxu1 %vm1941_vm12, %v1433_v23  ;;  %v3286_v23 = vld [vmem:[%s4244_s5 + $0x30] sm:$0xff]  }
 0x313   :  { %2165 = vmatprep.mubr.bf16.mxu1 %v3305_v54  ;;  %2960 = vmatpush3.bf16.msra.mxu0 %v3282_v35  ;;  %v3308_v54 = vmov 0.0  }
 0x314   :  { %2961 = vmatprep.subr.bf16.mxu0 %v3283_v36 }
 0x317   :  { %2962 = vmatpush3.bf16.msra.mxu0 %v3284_v37  ;;  %v2945_v37 = vld [vmem:[%s4248_s8] ss:$0 sm:$0xff] }
 0x318   :  { %2963 = vmatprep.subr.bf16.mxu0 %v3285_v38 }
 0x31a   :  { %2921 = vmatmul.mubr.msk.bf16.gmra.mrb[12].mxu1 %vm1941_vm12, %v1435_v31 }
 0x31b   :  { %2964 = vmatpush3.bf16.msra.mxu0 %v3286_v23 }
 0x31c   :  { %2965 = vmatprep.subr.bf16.mxu0 %v3287_v24 }
 0x31f   :  { %2966 = vmatpush3.bf16.msra.mxu0 %v3288_v40 }
 0x320   :  { %2983 = vmatprep.subr.bf16.mxu0 %v3308_v54 }
 0x3d5   :  { %v2137_v55 = vpop.f32.mrb[0].mxu1 }
 0x3d6   :  { %v2139_v58 = vpop.f32.mrb[1].mxu1 }
 0x3d7   :  { %2178 = vst.msk [vmem:[#allocation4 + $0x8] sm:$0xff] %vm2177_vm13, %v2139_v58  ;;  %v2141_v59 = vpop.f32.mrb[2].mxu1 }
 0x3d8   :  { %v2143_v60 = vpop.f32.mrb[3].mxu1  ;;  %v4118_v61 = vmax.f32 %v2137_v55, %v2141_v59 }
 0x3d9   :  { %2180 = vst.msk [vmem:[#allocation4 + $0x18] sm:$0xff] %vm2177_vm13, %v2143_v60 }
 0x3dd   :  { %v2147_v39 = vpop.f32.mrb[4].mxu1 }
 0x3de   :  { %v2149_v62 = vpop.f32.mrb[5].mxu1  ;;  %v2201_v22 = vld [vmem:[#allocation4 + $0x8] sm:$0xff] }
 0x3df   :  { %2182 = vst.msk [vmem:[#allocation4 + $0x28] sm:$0xff] %vm2177_vm13, %v2149_v62  ;;  %v2151_v0 = vpop.f32.mrb[6].mxu1 }
 0x3e0   :  { %v2153_v1 = vpop.f32.mrb[7].mxu1  ;;  %v4122_v3 = vmax.f32 %v2147_v39, %v2151_v0  ;;  %v2203_v21 = vld [vmem:[#allocation4 + $0x18] sm:$0xff] }
 0x3e1   :  { %2184 = vst.msk [vmem:[#allocation4 + $0x38] sm:$0xff] %vm2177_vm13, %v2153_v1  ;;  %v2205_v15 = vmax.f32 %v2201_v22, %v2203_v21 }
 0x3e2   :  { %2227 = vrot.lane.b32.xlu0 %v4122_v3, %s3306_s3 }
 0x3e5   :  { %v2157_v4 = vpop.f32.mrb[8].mxu1 }
 0x3e6   :  { %v2159_v5 = vpop.f32.mrb[9].mxu1  ;;  %v2220_v6 = vld [vmem:[#allocation4 + $0x28] sm:$0xff] }
 0x3e7   :  { %2186 = vst.msk [vmem:[#allocation4 + $0x48] sm:$0xff] %vm2177_vm13, %v2159_v5  ;;  %v2161_v63 = vpop.f32.mrb[10].mxu1 }
 0x3e8   :  { %v2163_v47 = vpop.f32.mrb[11].mxu1  ;;  %v2222_v8 = vld [vmem:[#allocation4 + $0x38] sm:$0xff]  ;;  %v4128_v9 = vmax.f32 %v2157_v4, %v2161_v63 }
 0x3e9   :  { %2188 = vst.msk [vmem:[#allocation4 + $0x58] sm:$0xff] %vm2177_vm13, %v2163_v47  ;;  %v2224_v10 = vmax.f32 %v2220_v6, %v2222_v8 }
 0x3ea   :  { %2245 = vrot.lane.b32.xlu0 %v4128_v9, %s3306_s3 }
 0x3eb   :  { %2229 = vrot.lane.b32.xlu1 %v2224_v10, %s3306_s3 }
 0x3ed   :  { %v2167_v11 = vpop.f32.mrb[12].mxu1 }
 0x3ee   :  { %v2169_v13 = vpop.f32.mrb[13].mxu1  ;;  %v2238_v57 = vld [vmem:[#allocation4 + $0x48] sm:$0xff] }
 0x3ef   :  { %2190 = vst.msk [vmem:[#allocation4 + $0x68] sm:$0xff] %vm2177_vm13, %v2169_v13  ;;  %v2171_v14 = vpop.f32.mrb[14].mxu1  ;;  %v3289_v13 = vld [vmem:[%s4244_s5 + $0x80] sm:$0xff]  }
 0x3f0   :  { %v2173_v16 = vpop.f32.mrb[15].mxu1  ;;  %v2240_v17 = vld [vmem:[#allocation4 + $0x58] sm:$0xff]  ;;  %v4135_v18 = vmax.f32 %v2167_v11, %v2171_v14 }
 0x3f1   :  { %2192 = vst.msk [vmem:[#allocation4 + $0x78] sm:$0xff] %vm2177_vm13, %v2173_v16  ;;  %v2242_v7 = vmax.f32 %v2238_v57, %v2240_v17  ;;  %v3291_v57 = vld [vmem:[%s4244_s5 + $0x90] sm:$0xff]   ;;  %v3292_v17 = vld [vmem:[%s4244_s5 + $0x98] sm:$0xff]  }
 0x3f2   :  { %2263 = vrot.lane.b32.xlu0 %v4135_v18, %s3306_s3 }
 0x3f3   :  { %2247 = vrot.lane.b32.xlu1 %v2242_v7, %s3306_s3  ;;  %v3294_v7 = vld [vmem:[%s4246_s7 + $0x8] sm:$0xff]  }
 0x3f6   :  { %2208 = vrot.lane.b32.xlu0 %v4118_v61, %s3306_s3  ;;  %v2256_v51 = vld [vmem:[#allocation4 + $0x68] sm:$0xff] }
 0x3f8   :  { %v2258_v19 = vld [vmem:[#allocation4 + $0x78] sm:$0xff] }
 0x3f9   :  { %v2260_v20 = vmax.f32 %v2256_v51, %v2258_v19  ;;  %v3295_v51 = vld [vmem:[%s4246_s7 + $0x10] sm:$0xff]   ;;  %v3296_v19 = vld [vmem:[%s4246_s7 + $0x18] ss:$0 sps:$4 sm:$0x11]  }
 0x3fb   :  { %2265 = vrot.lane.b32.xlu1 %v2260_v20, %s3306_s3  ;;  %v2585_v20 = vsel %vm2583_vm2, %v3296_v19, 0 }
 0x3ff   :  { %2210 = vrot.lane.b32.xlu1 %v2205_v15, %s3306_s3  ;;  %v2923_v15 = vld [vmem:[%s4247_s6] ss:$0 sm:$0xff] }
 0x454   :  { %v2228_v41 = vpop.permute.xlu0 %2227 }
 0x45c   :  { %v2246_v49 = vpop.permute.xlu0 %2245 }
 0x45d   :  { %v2230_v43 = vpop.permute.xlu1 %2229 }
 0x45e   :  { %v2231_v2 = vsel %vm2212_vm14, %v2228_v41, %v2230_v43 }
 0x45f   :  { %v2233_v45 = vmax.f32 %v4122_v3, %v2231_v2 }
 0x461   :  { %v2234_v46 = vadd.f32 %v2922_v44, %v2233_v45 }
 0x463   :  { %v2235_v48 = vmax.f32 %v2234_v46, 0.0 }
 0x464   :  { %v2264_v56 = vpop.permute.xlu0 %2263 }
 0x465   :  { %v2248_v50 = vpop.permute.xlu1 %2247  ;;  %v2236_v52 = vpack.c.bf16 %v2235_v48, %v2235_v48 }
 0x466   :  { %v2249_v12 = vsel %vm2212_vm14, %v2246_v49, %v2248_v50 }
 0x467   :  { %v2251_v42 = vmax.f32 %v4128_v9, %v2249_v12  ;;  %2274 = vrot.lane.b32.xlu0 %v2236_v52, %s3307_s14 }
 0x468   :  { %v2209_v62 = vpop.permute.xlu0 %2208 }
 0x469   :  { %v2252_v31 = vadd.f32 %v2922_v44, %v2251_v42 }
 0x46b   :  { %v2253_v53 = vmax.f32 %v2252_v31, 0.0 }
 0x46d   :  { %v2266_v55 = vpop.permute.xlu1 %2265  ;;  %v2254_v58 = vpack.c.bf16 %v2253_v53, %v2253_v53 }
 0x46e   :  { %v2267_v59 = vsel %vm2212_vm14, %v2264_v56, %v2266_v55 }
 0x46f   :  { %v2269_v60 = vmax.f32 %v4135_v18, %v2267_v59  ;;  %2277 = vrot.lane.b32.xlu1 %v2254_v58, %s3309_s4  ;;  %v3293_v18 = vld [vmem:[%s4246_s7] sm:$0xff]  }
 0x471   :  { %v2270_v39 = vadd.f32 %v2922_v44, %v2269_v60  ;;  %v2211_v0 = vpop.permute.xlu1 %2210 }
 0x472   :  { %v2213_v1 = vsel %vm2212_vm14, %v2209_v62, %v2211_v0 }
 0x473   :  { %v2271_v3 = vmax.f32 %v2270_v39, 0.0  ;;  %v2215_v4 = vmax.f32 %v4118_v61, %v2213_v1  ;;  %v3290_v61 = vld [vmem:[%s4244_s5 + $0x88] sm:$0xff]  }
 0x475   :  { %v2272_v5 = vpack.c.bf16 %v2271_v3, %v2271_v3  ;;  %v2216_v63 = vadd.f32 %v2922_v44, %v2215_v4 }
 0x477   :  { %2280 = vrot.lane.b32.xlu0 %v2272_v5, %s3300_s22  ;;  %v2217_v47 = vmax.f32 %v2216_v63, 0.0 }
 0x479   :  { %v2218_v9 = vpack.c.bf16 %v2217_v47, %v2217_v47 }
 0x4d9   :  { %v2275_v6 = vpop.permute.xlu0 %2274 }
 0x4da   :  { %v2285_v16 = vsel %vm2282_vm15, %v2218_v9, %v2275_v6 }
 0x4e1   :  { %v2278_v8 = vpop.permute.xlu1 %2277 }
 0x4e2   :  { %v2288_v10 = vsel %vm2177_vm13, %v2275_v6, %v2278_v8 }
 0x4e9   :  { %v2281_v11 = vpop.permute.xlu0 %2280 }
 0x4ea   :  { %v2290_v14 = vsel %vm640_vm5, %v2288_v10, %v2281_v11 }
 0x4eb   :  { %2494 = vmatprep.mubr.bf16.mxu0 %v2290_v14 }
 0x4ec   :  { %2495 = vmatmul.mubr.bf16.vlgmr.msra.gmra.mrb[48].mxu0 %v2285_v16 }
 0x4ed   :  { %2984 = vmatpush3.bf16.msra.mxu0 %v3289_v13  ;;  %2991 = vmatprep.mubr.msk.bf16.mxu0 %vm3310_vm0, %v3308_v54 }
 0x4ee   :  { %2985 = vmatprep.subr.bf16.mxu0 %v3308_v54 }
 0x4f1   :  { %2986 = vmatpush3.bf16.msra.mxu0 %v3290_v61 }
 0x4f2   :  { %2987 = vmatprep.subr.bf16.mxu0 %v3308_v54 }
 0x4f5   :  { %2988 = vmatpush3.bf16.msra.mxu0 %v3291_v57 }
 0x4f6   :  { %2989 = vmatprep.subr.bf16.mxu0 %v3308_v54 }
 0x4f9   :  { %2990 = vmatpush3.bf16.msra.mxu0 %v3292_v17 }
 0x4fa   :  { %2995 = vmatprep.subr.bf16.mxu0 %v3308_v54 }
 0x4fc   :  { %2992 = vmatmul.mubr.msk.bf16.vlgmr.msra.gmra.mrb[52].mxu0 %vm2459_vm1, %v2281_v11 }
 0x4fd   :  { %3003 = vmatprep.mubr.msk.bf16.mxu0 %vm3310_vm0, %v3308_v54  ;;  %2996 = vmatpush3.bf16.msra.mxu0 %v3293_v18 }
 0x4fe   :  { %2997 = vmatprep.subr.bf16.mxu0 %v3308_v54 }
 0x501   :  { %2998 = vmatpush3.bf16.msra.mxu0 %v3294_v7 }
 0x502   :  { %2999 = vmatprep.subr.bf16.mxu0 %v3308_v54 }
 0x505   :  { %3000 = vmatpush3.bf16.msra.mxu0 %v3295_v51 }
 0x506   :  { %3001 = vmatprep.subr.bf16.mxu0 %v3308_v54 }
 0x509   :  { %3002 = vmatpush3.bf16.msra.mxu0 %v2585_v20 }
 0x5bf   :  { %v2967_v21 = vpop.f32.mrb[48].mxu0 }
 0x5c0   :  { %v2968_v22 = vpop.f32.mrb[49].mxu0 }
 0x5c1   :  { %v2969_v25 = vadd.f32 %v2968_v22, %v2967_v21  ;;  %v2970_v26 = vpop.f32.mrb[50].mxu0 }
 0x5c2   :  { %v2971_v27 = vpop.f32.mrb[51].mxu0 }
 0x5c3   :  { %v2497_v28 = vadd.f32 %v2969_v25, %v2923_v15 }
 0x5cf   :  { %v2536_v29 = vpop.f32.mrb[52].mxu0 }
 0x5d0   :  { %v2537_v30 = vadd.f32 %v2536_v29, %v2497_v28  ;;  %v2993_v32 = vpop.f32.mrb[53].mxu0 }
 0x5d1   :  { %v2539_v33 = vpop.f32.mrb[54].mxu0 }
 0x5d2   :  { %v2542_v34 = vmax.f32 %v2537_v30, 0.0  ;;  %v2994_v35 = vpop.f32.mrb[55].mxu0 }
 0x5d4   :  { %v2543_v36 = vpack.c.bf16 %v2542_v34, %v2542_v34 }
 0x5d6   :  { %3004 = vmatmul.mubr.msk.bf16.vlgmr.msra.gmra.mrb[56].mxu0 %vm2579_vm3, %v2543_v36 }
 0x6a9   :  { %v2621_v38 = vpop.f32.mrb[56].mxu0 }
 0x6aa   :  { %v2622_v23 = vadd.f32 %v2945_v37, %v2621_v38  ;;  %v3005_v24 = vpop.f32.mrb[57].mxu0 }
 0x6ab   :  { %v2624_v40 = vpop.f32.mrb[58].mxu0 }
 0x6ac   :  { %2628 = vst.msk [vmem:[%s4249_s9] sm:$0xff] %vm2627_vm4, %v2622_v23  ;;  %v3006_v41 = vpop.f32.mrb[59].mxu0 }

</bundles_post_ra>
